<compile_context>
chip_gen: v6e
topology: v6e:2x2x1
jax: 0.10.0
libtpu: 0.0.40
codegen_flags: <defaults>
</compile_context>

<pallas_src>
import functools

import jax
import jax.numpy as jnp
from jax import lax
from jax.experimental import pallas as pl
from jax.experimental.pallas import tpu as pltpu


# Layer dims of the QNetwork, PyTorch (out_features, in_features) order.
_LAYER_DIMS = ((16, 4), (8, 16), (2, 8))

_LANE = 128              # vreg lane width
_SUB = 8                 # vreg sublane count
_CHUNK = _SUB * _LANE    # 1024 batch elements = one (8,128) vreg per feature plane


def _param_offsets(layer_dims):
    """(w_off, b_off) of each layer inside the flat packed parameter buffer."""
    offs, off = [], 0
    for n, k in layer_dims:
        offs.append((off, off + n * k))
        off += n * k + n
    return tuple(offs), off


def _qnet_kernel(p_ref, x_ref, o_ref, *, layer_dims):
    """p_ref: flat f32 params in SMEM; x_ref: (in, S, 128); o_ref: (out, S, 128)."""
    in_size = layer_dims[0][1]
    out_size = layer_dims[-1][0]
    s_total = x_ref.shape[1]
    num_sub = s_total // _SUB
    offs, _ = _param_offsets(layer_dims)
    last = len(layer_dims) - 1

    def process(base):
        # One (8,128) plane per input feature; cast once to f32 (no-op for f32 inputs).
        h = [x_ref[kk, pl.ds(base, _SUB), :].astype(jnp.float32)
             for kk in range(in_size)]
        for li, (n, k) in enumerate(layer_dims):
            w_off, b_off = offs[li]
            nxt = []
            for nn in range(n):
                # Scalar-weight MAC on full vregs: acc += W[nn, kk] * plane_kk
                acc = p_ref[w_off + nn * k] * h[0]
                for kk in range(1, k):
                    acc = acc + p_ref[w_off + nn * k + kk] * h[kk]
                acc = acc + p_ref[b_off + nn]          # bias as scalar broadcast
                if li != last:
                    acc = jnp.maximum(acc, 0.0)        # fused ReLU
                nxt.append(acc)
            h = nxt
        for nn in range(out_size):
            # Full (8,128) tile -> unmasked vst.
            o_ref[nn, pl.ds(base, _SUB), :] = h[nn].astype(o_ref.dtype)

    def body(s, carry):
        process(pl.multiple_of(s * _SUB, _SUB))
        return carry

    # Modest unrolling so adjacent sub-chunks' SMEM scalar loads / stores can overlap
    # without exploding code size.
    unroll = 4 if num_sub % 4 == 0 else (2 if num_sub % 2 == 0 else 1)
    lax.fori_loop(0, num_sub, body, 0, unroll=unroll)


def _pack_params_flat(params, layer_dims):
    """Flatten [W_row_major | b] of every layer into one small f32 vector (SMEM)."""
    parts = []
    for li, (n, k) in enumerate(layer_dims):
        w = jnp.asarray(params[2 * li], jnp.float32).reshape(n * k)   # (out, in) order
        b = jnp.asarray(params[2 * li + 1], jnp.float32).reshape(n)
        parts += [w, b]
    return jnp.concatenate(parts)


def qnetwork_forward(x, params, *, tb=32768):
    """QNetwork forward.  x: (B, 4) float -> (B, 2) in x.dtype.  Accumulation is f32."""
    B, in_size = x.shape
    layer_dims = _LAYER_DIMS
    out_size = layer_dims[-1][0]
    assert in_size == layer_dims[0][1]

    # --- batch tiling --------------------------------------------------------
    n_chunks = pl.cdiv(B, _CHUNK)                     # number of 1024-element chunks
    tb_chunks = min(max(tb // _CHUNK, 1), n_chunks)
    if n_chunks >= 2:                                 # v7x megacore: >= 2 parallel steps
        tb_chunks = min(tb_chunks, pl.cdiv(n_chunks, 2))
    grid = pl.cdiv(n_chunks, tb_chunks)
    TB = tb_chunks * _CHUNK
    Bp = grid * TB
    S = TB // _LANE

    # --- input relayout: (B, in) -> (in, Bp/128, 128) ------------------------
    x_t = x.T
    if Bp != B:
        x_t = jnp.pad(x_t, ((0, 0), (0, Bp - B)))
    x3 = x_t.reshape(in_size, Bp // _LANE, _LANE)

    packed = _pack_params_flat(params, layer_dims)

    itemsize = jnp.dtype(x.dtype).itemsize
    cost = pl.CostEstimate(
        flops=2 * Bp * sum(n * k for n, k in layer_dims),
        transcendentals=0,
        bytes_accessed=Bp * (in_size + out_size) * itemsize + packed.size * 4,
    )

    kernel = functools.partial(_qnet_kernel, layer_dims=layer_dims)

    out3 = pl.pallas_call(
        kernel,
        out_shape=jax.ShapeDtypeStruct((out_size, Bp // _LANE, _LANE), x.dtype),
        grid_spec=pltpu.PrefetchScalarGridSpec(
            num_scalar_prefetch=0,
            grid=(grid,),
            in_specs=[
                # Flat parameter vector, SMEM-resident; read as scalars in-kernel.
                pl.BlockSpec(memory_space=pltpu.MemorySpace.SMEM),
                # Activations: (in, S, 128) tile marching along the batch-chunk axis.
                pl.BlockSpec((in_size, S, _LANE), lambda i: (0, i, 0)),
            ],
            out_specs=pl.BlockSpec((out_size, S, _LANE), lambda i: (0, i, 0)),
        ),
        compiler_params=pltpu.CompilerParams(
            dimension_semantics=("parallel",),        # batch tiles across TCs (v7x)
        ),
        cost_estimate=cost,
    )(packed, x3)

    # Back to (B, out) row-major.
    return out3.reshape(out_size, Bp)[:, :B].T


def init_params(key, input_size=4, output_size=2):
    # PyTorch-default uniform(-1/sqrt(fan_in), 1/sqrt(fan_in)); weights stored (out, in).
    dims = [(input_size, 16), (16, 8), (8, output_size)]
    params = []
    keys = jax.random.split(key, 2 * len(dims))
    for i, (fan_in, fan_out) in enumerate(dims):
        bound = 1.0 / float(fan_in) ** 0.5
        w = jax.random.uniform(keys[2 * i], (fan_out, fan_in), jnp.float32, -bound, bound)
        b = jax.random.uniform(keys[2 * i + 1], (fan_out,), jnp.float32, -bound, bound)
        params += [w, b]
    return tuple(params)


def reference_forward(x, params):
    w1, b1, w2, b2, w3, b3 = params
    h1 = jnp.maximum(x @ w1.T + b1, 0.0)
    h2 = jnp.maximum(h1 @ w2.T + b2, 0.0)
    return h2 @ w3.T + b3


if __name__ == "__main__":
    input_size = 4
    output_size = 2
    batch = 8

    key = jax.random.PRNGKey(0)
    k_x, k_p = jax.random.split(key)
    x = jax.random.normal(k_x, (batch, input_size), dtype=jnp.float32)
    params = init_params(k_p, input_size, output_size)

    out = qnetwork_forward(x, params)
    out = jax.block_until_ready(out)

    ref = reference_forward(x, params)
    assert out.shape == (batch, output_size)
    assert jnp.allclose(out, ref, atol=1e-5, rtol=1e-5)

    print("KERNEL_OK")
</pallas_src>

<mosaic_0001>
module attributes {stable_mosaic.version = 11 : i64} {
  func.func @_qnet_kernel(%arg0: i32, %arg1: memref<234xf32, #tpu.memory_space<smem>>, %arg2: memref<4x8x128xf32, #tpu.memory_space<vmem>>, %arg3: memref<2x8x128xf32, #tpu.memory_space<vmem>>) attributes {dimension_semantics = [#tpu.dimension_semantics<parallel>], iteration_bounds = array<i64: 1>, scalar_prefetch = 0 : i64, scratch_operands = 0 : i64, tpu.core_type = #tpu.core_type<tc>, window_params = [{transform_indices = @transform_0, window_bounds = array<i64: 234>}, {transform_indices = @transform_1, window_bounds = array<i64: 4, 8, 128>}, {transform_indices = @transform_2, window_bounds = array<i64: 2, 8, 128>}]} {
    %c0_i32 = arith.constant 0 : i32
    %c8_i32 = arith.constant 8 : i32
    %0 = arith.muli %c0_i32, %c8_i32 : i32
    %1 = tpu.assume_multiple %0, 8 : i32
    %c0 = arith.constant 0 : index
    %2 = arith.index_cast %1 : i32 to index
    %c0_0 = arith.constant 0 : index
    %3 = vector.load %arg2[%c0, %2, %c0_0] : memref<4x8x128xf32, #tpu.memory_space<vmem>>, vector<1x8x128xf32>
    %4 = vector.shape_cast %3 : vector<1x8x128xf32> to vector<8x128xf32>
    %c1 = arith.constant 1 : index
    %5 = arith.index_cast %1 : i32 to index
    %c0_1 = arith.constant 0 : index
    %6 = vector.load %arg2[%c1, %5, %c0_1] : memref<4x8x128xf32, #tpu.memory_space<vmem>>, vector<1x8x128xf32>
    %7 = vector.shape_cast %6 : vector<1x8x128xf32> to vector<8x128xf32>
    %c2 = arith.constant 2 : index
    %8 = arith.index_cast %1 : i32 to index
    %c0_2 = arith.constant 0 : index
    %9 = vector.load %arg2[%c2, %8, %c0_2] : memref<4x8x128xf32, #tpu.memory_space<vmem>>, vector<1x8x128xf32>
    %10 = vector.shape_cast %9 : vector<1x8x128xf32> to vector<8x128xf32>
    %c3 = arith.constant 3 : index
    %11 = arith.index_cast %1 : i32 to index
    %c0_3 = arith.constant 0 : index
    %12 = vector.load %arg2[%c3, %11, %c0_3] : memref<4x8x128xf32, #tpu.memory_space<vmem>>, vector<1x8x128xf32>
    %13 = vector.shape_cast %12 : vector<1x8x128xf32> to vector<8x128xf32>
    %c0_4 = arith.constant 0 : index
    %14 = memref.load %arg1[%c0_4] : memref<234xf32, #tpu.memory_space<smem>>
    %15 = vector.broadcast %14 : f32 to vector<8x128xf32>
    %16 = arith.mulf %15, %4 : vector<8x128xf32>
    %c1_5 = arith.constant 1 : index
    %17 = memref.load %arg1[%c1_5] : memref<234xf32, #tpu.memory_space<smem>>
    %18 = vector.broadcast %17 : f32 to vector<8x128xf32>
    %19 = arith.mulf %18, %7 : vector<8x128xf32>
    %20 = arith.addf %16, %19 : vector<8x128xf32>
    %c2_6 = arith.constant 2 : index
    %21 = memref.load %arg1[%c2_6] : memref<234xf32, #tpu.memory_space<smem>>
    %22 = vector.broadcast %21 : f32 to vector<8x128xf32>
    %23 = arith.mulf %22, %10 : vector<8x128xf32>
    %24 = arith.addf %20, %23 : vector<8x128xf32>
    %c3_7 = arith.constant 3 : index
    %25 = memref.load %arg1[%c3_7] : memref<234xf32, #tpu.memory_space<smem>>
    %26 = vector.broadcast %25 : f32 to vector<8x128xf32>
    %27 = arith.mulf %26, %13 : vector<8x128xf32>
    %28 = arith.addf %24, %27 : vector<8x128xf32>
    %c64 = arith.constant 64 : index
    %29 = memref.load %arg1[%c64] : memref<234xf32, #tpu.memory_space<smem>>
    %30 = vector.broadcast %29 : f32 to vector<8x128xf32>
    %31 = arith.addf %28, %30 : vector<8x128xf32>
    %cst = arith.constant 0.000000e+00 : f32
    %32 = vector.broadcast %cst : f32 to vector<8x128xf32>
    %33 = arith.maximumf %31, %32 : vector<8x128xf32>
    %c4 = arith.constant 4 : index
    %34 = memref.load %arg1[%c4] : memref<234xf32, #tpu.memory_space<smem>>
    %35 = vector.broadcast %34 : f32 to vector<8x128xf32>
    %36 = arith.mulf %35, %4 : vector<8x128xf32>
    %c5 = arith.constant 5 : index
    %37 = memref.load %arg1[%c5] : memref<234xf32, #tpu.memory_space<smem>>
    %38 = vector.broadcast %37 : f32 to vector<8x128xf32>
    %39 = arith.mulf %38, %7 : vector<8x128xf32>
    %40 = arith.addf %36, %39 : vector<8x128xf32>
    %c6 = arith.constant 6 : index
    %41 = memref.load %arg1[%c6] : memref<234xf32, #tpu.memory_space<smem>>
    %42 = vector.broadcast %41 : f32 to vector<8x128xf32>
    %43 = arith.mulf %42, %10 : vector<8x128xf32>
    %44 = arith.addf %40, %43 : vector<8x128xf32>
    %c7 = arith.constant 7 : index
    %45 = memref.load %arg1[%c7] : memref<234xf32, #tpu.memory_space<smem>>
    %46 = vector.broadcast %45 : f32 to vector<8x128xf32>
    %47 = arith.mulf %46, %13 : vector<8x128xf32>
    %48 = arith.addf %44, %47 : vector<8x128xf32>
    %c65 = arith.constant 65 : index
    %49 = memref.load %arg1[%c65] : memref<234xf32, #tpu.memory_space<smem>>
    %50 = vector.broadcast %49 : f32 to vector<8x128xf32>
    %51 = arith.addf %48, %50 : vector<8x128xf32>
    %cst_8 = arith.constant 0.000000e+00 : f32
    %52 = vector.broadcast %cst_8 : f32 to vector<8x128xf32>
    %53 = arith.maximumf %51, %52 : vector<8x128xf32>
    %c8 = arith.constant 8 : index
    %54 = memref.load %arg1[%c8] : memref<234xf32, #tpu.memory_space<smem>>
    %55 = vector.broadcast %54 : f32 to vector<8x128xf32>
    %56 = arith.mulf %55, %4 : vector<8x128xf32>
    %c9 = arith.constant 9 : index
    %57 = memref.load %arg1[%c9] : memref<234xf32, #tpu.memory_space<smem>>
    %58 = vector.broadcast %57 : f32 to vector<8x128xf32>
    %59 = arith.mulf %58, %7 : vector<8x128xf32>
    %60 = arith.addf %56, %59 : vector<8x128xf32>
    %c10 = arith.constant 10 : index
    %61 = memref.load %arg1[%c10] : memref<234xf32, #tpu.memory_space<smem>>
    %62 = vector.broadcast %61 : f32 to vector<8x128xf32>
    %63 = arith.mulf %62, %10 : vector<8x128xf32>
    %64 = arith.addf %60, %63 : vector<8x128xf32>
    %c11 = arith.constant 11 : index
    %65 = memref.load %arg1[%c11] : memref<234xf32, #tpu.memory_space<smem>>
    %66 = vector.broadcast %65 : f32 to vector<8x128xf32>
    %67 = arith.mulf %66, %13 : vector<8x128xf32>
    %68 = arith.addf %64, %67 : vector<8x128xf32>
    %c66 = arith.constant 66 : index
    %69 = memref.load %arg1[%c66] : memref<234xf32, #tpu.memory_space<smem>>
    %70 = vector.broadcast %69 : f32 to vector<8x128xf32>
    %71 = arith.addf %68, %70 : vector<8x128xf32>
    %cst_9 = arith.constant 0.000000e+00 : f32
    %72 = vector.broadcast %cst_9 : f32 to vector<8x128xf32>
    %73 = arith.maximumf %71, %72 : vector<8x128xf32>
    %c12 = arith.constant 12 : index
    %74 = memref.load %arg1[%c12] : memref<234xf32, #tpu.memory_space<smem>>
    %75 = vector.broadcast %74 : f32 to vector<8x128xf32>
    %76 = arith.mulf %75, %4 : vector<8x128xf32>
    %c13 = arith.constant 13 : index
    %77 = memref.load %arg1[%c13] : memref<234xf32, #tpu.memory_space<smem>>
    %78 = vector.broadcast %77 : f32 to vector<8x128xf32>
    %79 = arith.mulf %78, %7 : vector<8x128xf32>
    %80 = arith.addf %76, %79 : vector<8x128xf32>
    %c14 = arith.constant 14 : index
    %81 = memref.load %arg1[%c14] : memref<234xf32, #tpu.memory_space<smem>>
    %82 = vector.broadcast %81 : f32 to vector<8x128xf32>
    %83 = arith.mulf %82, %10 : vector<8x128xf32>
    %84 = arith.addf %80, %83 : vector<8x128xf32>
    %c15 = arith.constant 15 : index
    %85 = memref.load %arg1[%c15] : memref<234xf32, #tpu.memory_space<smem>>
    %86 = vector.broadcast %85 : f32 to vector<8x128xf32>
    %87 = arith.mulf %86, %13 : vector<8x128xf32>
    %88 = arith.addf %84, %87 : vector<8x128xf32>
    %c67 = arith.constant 67 : index
    %89 = memref.load %arg1[%c67] : memref<234xf32, #tpu.memory_space<smem>>
    %90 = vector.broadcast %89 : f32 to vector<8x128xf32>
    %91 = arith.addf %88, %90 : vector<8x128xf32>
    %cst_10 = arith.constant 0.000000e+00 : f32
    %92 = vector.broadcast %cst_10 : f32 to vector<8x128xf32>
    %93 = arith.maximumf %91, %92 : vector<8x128xf32>
    %c16 = arith.constant 16 : index
    %94 = memref.load %arg1[%c16] : memref<234xf32, #tpu.memory_space<smem>>
    %95 = vector.broadcast %94 : f32 to vector<8x128xf32>
    %96 = arith.mulf %95, %4 : vector<8x128xf32>
    %c17 = arith.constant 17 : index
    %97 = memref.load %arg1[%c17] : memref<234xf32, #tpu.memory_space<smem>>
    %98 = vector.broadcast %97 : f32 to vector<8x128xf32>
    %99 = arith.mulf %98, %7 : vector<8x128xf32>
    %100 = arith.addf %96, %99 : vector<8x128xf32>
    %c18 = arith.constant 18 : index
    %101 = memref.load %arg1[%c18] : memref<234xf32, #tpu.memory_space<smem>>
    %102 = vector.broadcast %101 : f32 to vector<8x128xf32>
    %103 = arith.mulf %102, %10 : vector<8x128xf32>
    %104 = arith.addf %100, %103 : vector<8x128xf32>
    %c19 = arith.constant 19 : index
    %105 = memref.load %arg1[%c19] : memref<234xf32, #tpu.memory_space<smem>>
    %106 = vector.broadcast %105 : f32 to vector<8x128xf32>
    %107 = arith.mulf %106, %13 : vector<8x128xf32>
    %108 = arith.addf %104, %107 : vector<8x128xf32>
    %c68 = arith.constant 68 : index
    %109 = memref.load %arg1[%c68] : memref<234xf32, #tpu.memory_space<smem>>
    %110 = vector.broadcast %109 : f32 to vector<8x128xf32>
    %111 = arith.addf %108, %110 : vector<8x128xf32>
    %cst_11 = arith.constant 0.000000e+00 : f32
    %112 = vector.broadcast %cst_11 : f32 to vector<8x128xf32>
    %113 = arith.maximumf %111, %112 : vector<8x128xf32>
    %c20 = arith.constant 20 : index
    %114 = memref.load %arg1[%c20] : memref<234xf32, #tpu.memory_space<smem>>
    %115 = vector.broadcast %114 : f32 to vector<8x128xf32>
    %116 = arith.mulf %115, %4 : vector<8x128xf32>
    %c21 = arith.constant 21 : index
    %117 = memref.load %arg1[%c21] : memref<234xf32, #tpu.memory_space<smem>>
    %118 = vector.broadcast %117 : f32 to vector<8x128xf32>
    %119 = arith.mulf %118, %7 : vector<8x128xf32>
    %120 = arith.addf %116, %119 : vector<8x128xf32>
    %c22 = arith.constant 22 : index
    %121 = memref.load %arg1[%c22] : memref<234xf32, #tpu.memory_space<smem>>
    %122 = vector.broadcast %121 : f32 to vector<8x128xf32>
    %123 = arith.mulf %122, %10 : vector<8x128xf32>
    %124 = arith.addf %120, %123 : vector<8x128xf32>
    %c23 = arith.constant 23 : index
    %125 = memref.load %arg1[%c23] : memref<234xf32, #tpu.memory_space<smem>>
    %126 = vector.broadcast %125 : f32 to vector<8x128xf32>
    %127 = arith.mulf %126, %13 : vector<8x128xf32>
    %128 = arith.addf %124, %127 : vector<8x128xf32>
    %c69 = arith.constant 69 : index
    %129 = memref.load %arg1[%c69] : memref<234xf32, #tpu.memory_space<smem>>
    %130 = vector.broadcast %129 : f32 to vector<8x128xf32>
    %131 = arith.addf %128, %130 : vector<8x128xf32>
    %cst_12 = arith.constant 0.000000e+00 : f32
    %132 = vector.broadcast %cst_12 : f32 to vector<8x128xf32>
    %133 = arith.maximumf %131, %132 : vector<8x128xf32>
    %c24 = arith.constant 24 : index
    %134 = memref.load %arg1[%c24] : memref<234xf32, #tpu.memory_space<smem>>
    %135 = vector.broadcast %134 : f32 to vector<8x128xf32>
    %136 = arith.mulf %135, %4 : vector<8x128xf32>
    %c25 = arith.constant 25 : index
    %137 = memref.load %arg1[%c25] : memref<234xf32, #tpu.memory_space<smem>>
    %138 = vector.broadcast %137 : f32 to vector<8x128xf32>
    %139 = arith.mulf %138, %7 : vector<8x128xf32>
    %140 = arith.addf %136, %139 : vector<8x128xf32>
    %c26 = arith.constant 26 : index
    %141 = memref.load %arg1[%c26] : memref<234xf32, #tpu.memory_space<smem>>
    %142 = vector.broadcast %141 : f32 to vector<8x128xf32>
    %143 = arith.mulf %142, %10 : vector<8x128xf32>
    %144 = arith.addf %140, %143 : vector<8x128xf32>
    %c27 = arith.constant 27 : index
    %145 = memref.load %arg1[%c27] : memref<234xf32, #tpu.memory_space<smem>>
    %146 = vector.broadcast %145 : f32 to vector<8x128xf32>
    %147 = arith.mulf %146, %13 : vector<8x128xf32>
    %148 = arith.addf %144, %147 : vector<8x128xf32>
    %c70 = arith.constant 70 : index
    %149 = memref.load %arg1[%c70] : memref<234xf32, #tpu.memory_space<smem>>
    %150 = vector.broadcast %149 : f32 to vector<8x128xf32>
    %151 = arith.addf %148, %150 : vector<8x128xf32>
    %cst_13 = arith.constant 0.000000e+00 : f32
    %152 = vector.broadcast %cst_13 : f32 to vector<8x128xf32>
    %153 = arith.maximumf %151, %152 : vector<8x128xf32>
    %c28 = arith.constant 28 : index
    %154 = memref.load %arg1[%c28] : memref<234xf32, #tpu.memory_space<smem>>
    %155 = vector.broadcast %154 : f32 to vector<8x128xf32>
    %156 = arith.mulf %155, %4 : vector<8x128xf32>
    %c29 = arith.constant 29 : index
    %157 = memref.load %arg1[%c29] : memref<234xf32, #tpu.memory_space<smem>>
    %158 = vector.broadcast %157 : f32 to vector<8x128xf32>
    %159 = arith.mulf %158, %7 : vector<8x128xf32>
    %160 = arith.addf %156, %159 : vector<8x128xf32>
    %c30 = arith.constant 30 : index
    %161 = memref.load %arg1[%c30] : memref<234xf32, #tpu.memory_space<smem>>
    %162 = vector.broadcast %161 : f32 to vector<8x128xf32>
    %163 = arith.mulf %162, %10 : vector<8x128xf32>
    %164 = arith.addf %160, %163 : vector<8x128xf32>
    %c31 = arith.constant 31 : index
    %165 = memref.load %arg1[%c31] : memref<234xf32, #tpu.memory_space<smem>>
    %166 = vector.broadcast %165 : f32 to vector<8x128xf32>
    %167 = arith.mulf %166, %13 : vector<8x128xf32>
    %168 = arith.addf %164, %167 : vector<8x128xf32>
    %c71 = arith.constant 71 : index
    %169 = memref.load %arg1[%c71] : memref<234xf32, #tpu.memory_space<smem>>
    %170 = vector.broadcast %169 : f32 to vector<8x128xf32>
    %171 = arith.addf %168, %170 : vector<8x128xf32>
    %cst_14 = arith.constant 0.000000e+00 : f32
    %172 = vector.broadcast %cst_14 : f32 to vector<8x128xf32>
    %173 = arith.maximumf %171, %172 : vector<8x128xf32>
    %c32 = arith.constant 32 : index
    %174 = memref.load %arg1[%c32] : memref<234xf32, #tpu.memory_space<smem>>
    %175 = vector.broadcast %174 : f32 to vector<8x128xf32>
    %176 = arith.mulf %175, %4 : vector<8x128xf32>
    %c33 = arith.constant 33 : index
    %177 = memref.load %arg1[%c33] : memref<234xf32, #tpu.memory_space<smem>>
    %178 = vector.broadcast %177 : f32 to vector<8x128xf32>
    %179 = arith.mulf %178, %7 : vector<8x128xf32>
    %180 = arith.addf %176, %179 : vector<8x128xf32>
    %c34 = arith.constant 34 : index
    %181 = memref.load %arg1[%c34] : memref<234xf32, #tpu.memory_space<smem>>
    %182 = vector.broadcast %181 : f32 to vector<8x128xf32>
    %183 = arith.mulf %182, %10 : vector<8x128xf32>
    %184 = arith.addf %180, %183 : vector<8x128xf32>
    %c35 = arith.constant 35 : index
    %185 = memref.load %arg1[%c35] : memref<234xf32, #tpu.memory_space<smem>>
    %186 = vector.broadcast %185 : f32 to vector<8x128xf32>
    %187 = arith.mulf %186, %13 : vector<8x128xf32>
    %188 = arith.addf %184, %187 : vector<8x128xf32>
    %c72 = arith.constant 72 : index
    %189 = memref.load %arg1[%c72] : memref<234xf32, #tpu.memory_space<smem>>
    %190 = vector.broadcast %189 : f32 to vector<8x128xf32>
    %191 = arith.addf %188, %190 : vector<8x128xf32>
    %cst_15 = arith.constant 0.000000e+00 : f32
    %192 = vector.broadcast %cst_15 : f32 to vector<8x128xf32>
    %193 = arith.maximumf %191, %192 : vector<8x128xf32>
    %c36 = arith.constant 36 : index
    %194 = memref.load %arg1[%c36] : memref<234xf32, #tpu.memory_space<smem>>
    %195 = vector.broadcast %194 : f32 to vector<8x128xf32>
    %196 = arith.mulf %195, %4 : vector<8x128xf32>
    %c37 = arith.constant 37 : index
    %197 = memref.load %arg1[%c37] : memref<234xf32, #tpu.memory_space<smem>>
    %198 = vector.broadcast %197 : f32 to vector<8x128xf32>
    %199 = arith.mulf %198, %7 : vector<8x128xf32>
    %200 = arith.addf %196, %199 : vector<8x128xf32>
    %c38 = arith.constant 38 : index
    %201 = memref.load %arg1[%c38] : memref<234xf32, #tpu.memory_space<smem>>
    %202 = vector.broadcast %201 : f32 to vector<8x128xf32>
    %203 = arith.mulf %202, %10 : vector<8x128xf32>
    %204 = arith.addf %200, %203 : vector<8x128xf32>
    %c39 = arith.constant 39 : index
    %205 = memref.load %arg1[%c39] : memref<234xf32, #tpu.memory_space<smem>>
    %206 = vector.broadcast %205 : f32 to vector<8x128xf32>
    %207 = arith.mulf %206, %13 : vector<8x128xf32>
    %208 = arith.addf %204, %207 : vector<8x128xf32>
    %c73 = arith.constant 73 : index
    %209 = memref.load %arg1[%c73] : memref<234xf32, #tpu.memory_space<smem>>
    %210 = vector.broadcast %209 : f32 to vector<8x128xf32>
    %211 = arith.addf %208, %210 : vector<8x128xf32>
    %cst_16 = arith.constant 0.000000e+00 : f32
    %212 = vector.broadcast %cst_16 : f32 to vector<8x128xf32>
    %213 = arith.maximumf %211, %212 : vector<8x128xf32>
    %c40 = arith.constant 40 : index
    %214 = memref.load %arg1[%c40] : memref<234xf32, #tpu.memory_space<smem>>
    %215 = vector.broadcast %214 : f32 to vector<8x128xf32>
    %216 = arith.mulf %215, %4 : vector<8x128xf32>
    %c41 = arith.constant 41 : index
    %217 = memref.load %arg1[%c41] : memref<234xf32, #tpu.memory_space<smem>>
    %218 = vector.broadcast %217 : f32 to vector<8x128xf32>
    %219 = arith.mulf %218, %7 : vector<8x128xf32>
    %220 = arith.addf %216, %219 : vector<8x128xf32>
    %c42 = arith.constant 42 : index
    %221 = memref.load %arg1[%c42] : memref<234xf32, #tpu.memory_space<smem>>
    %222 = vector.broadcast %221 : f32 to vector<8x128xf32>
    %223 = arith.mulf %222, %10 : vector<8x128xf32>
    %224 = arith.addf %220, %223 : vector<8x128xf32>
    %c43 = arith.constant 43 : index
    %225 = memref.load %arg1[%c43] : memref<234xf32, #tpu.memory_space<smem>>
    %226 = vector.broadcast %225 : f32 to vector<8x128xf32>
    %227 = arith.mulf %226, %13 : vector<8x128xf32>
    %228 = arith.addf %224, %227 : vector<8x128xf32>
    %c74 = arith.constant 74 : index
    %229 = memref.load %arg1[%c74] : memref<234xf32, #tpu.memory_space<smem>>
    %230 = vector.broadcast %229 : f32 to vector<8x128xf32>
    %231 = arith.addf %228, %230 : vector<8x128xf32>
    %cst_17 = arith.constant 0.000000e+00 : f32
    %232 = vector.broadcast %cst_17 : f32 to vector<8x128xf32>
    %233 = arith.maximumf %231, %232 : vector<8x128xf32>
    %c44 = arith.constant 44 : index
    %234 = memref.load %arg1[%c44] : memref<234xf32, #tpu.memory_space<smem>>
    %235 = vector.broadcast %234 : f32 to vector<8x128xf32>
    %236 = arith.mulf %235, %4 : vector<8x128xf32>
    %c45 = arith.constant 45 : index
    %237 = memref.load %arg1[%c45] : memref<234xf32, #tpu.memory_space<smem>>
    %238 = vector.broadcast %237 : f32 to vector<8x128xf32>
    %239 = arith.mulf %238, %7 : vector<8x128xf32>
    %240 = arith.addf %236, %239 : vector<8x128xf32>
    %c46 = arith.constant 46 : index
    %241 = memref.load %arg1[%c46] : memref<234xf32, #tpu.memory_space<smem>>
    %242 = vector.broadcast %241 : f32 to vector<8x128xf32>
    %243 = arith.mulf %242, %10 : vector<8x128xf32>
    %244 = arith.addf %240, %243 : vector<8x128xf32>
    %c47 = arith.constant 47 : index
    %245 = memref.load %arg1[%c47] : memref<234xf32, #tpu.memory_space<smem>>
    %246 = vector.broadcast %245 : f32 to vector<8x128xf32>
    %247 = arith.mulf %246, %13 : vector<8x128xf32>
    %248 = arith.addf %244, %247 : vector<8x128xf32>
    %c75 = arith.constant 75 : index
    %249 = memref.load %arg1[%c75] : memref<234xf32, #tpu.memory_space<smem>>
    %250 = vector.broadcast %249 : f32 to vector<8x128xf32>
    %251 = arith.addf %248, %250 : vector<8x128xf32>
    %cst_18 = arith.constant 0.000000e+00 : f32
    %252 = vector.broadcast %cst_18 : f32 to vector<8x128xf32>
    %253 = arith.maximumf %251, %252 : vector<8x128xf32>
    %c48 = arith.constant 48 : index
    %254 = memref.load %arg1[%c48] : memref<234xf32, #tpu.memory_space<smem>>
    %255 = vector.broadcast %254 : f32 to vector<8x128xf32>
    %256 = arith.mulf %255, %4 : vector<8x128xf32>
    %c49 = arith.constant 49 : index
    %257 = memref.load %arg1[%c49] : memref<234xf32, #tpu.memory_space<smem>>
    %258 = vector.broadcast %257 : f32 to vector<8x128xf32>
    %259 = arith.mulf %258, %7 : vector<8x128xf32>
    %260 = arith.addf %256, %259 : vector<8x128xf32>
    %c50 = arith.constant 50 : index
    %261 = memref.load %arg1[%c50] : memref<234xf32, #tpu.memory_space<smem>>
    %262 = vector.broadcast %261 : f32 to vector<8x128xf32>
    %263 = arith.mulf %262, %10 : vector<8x128xf32>
    %264 = arith.addf %260, %263 : vector<8x128xf32>
    %c51 = arith.constant 51 : index
    %265 = memref.load %arg1[%c51] : memref<234xf32, #tpu.memory_space<smem>>
    %266 = vector.broadcast %265 : f32 to vector<8x128xf32>
    %267 = arith.mulf %266, %13 : vector<8x128xf32>
    %268 = arith.addf %264, %267 : vector<8x128xf32>
    %c76 = arith.constant 76 : index
    %269 = memref.load %arg1[%c76] : memref<234xf32, #tpu.memory_space<smem>>
    %270 = vector.broadcast %269 : f32 to vector<8x128xf32>
    %271 = arith.addf %268, %270 : vector<8x128xf32>
    %cst_19 = arith.constant 0.000000e+00 : f32
    %272 = vector.broadcast %cst_19 : f32 to vector<8x128xf32>
    %273 = arith.maximumf %271, %272 : vector<8x128xf32>
    %c52 = arith.constant 52 : index
    %274 = memref.load %arg1[%c52] : memref<234xf32, #tpu.memory_space<smem>>
    %275 = vector.broadcast %274 : f32 to vector<8x128xf32>
    %276 = arith.mulf %275, %4 : vector<8x128xf32>
    %c53 = arith.constant 53 : index
    %277 = memref.load %arg1[%c53] : memref<234xf32, #tpu.memory_space<smem>>
    %278 = vector.broadcast %277 : f32 to vector<8x128xf32>
    %279 = arith.mulf %278, %7 : vector<8x128xf32>
    %280 = arith.addf %276, %279 : vector<8x128xf32>
    %c54 = arith.constant 54 : index
    %281 = memref.load %arg1[%c54] : memref<234xf32, #tpu.memory_space<smem>>
    %282 = vector.broadcast %281 : f32 to vector<8x128xf32>
    %283 = arith.mulf %282, %10 : vector<8x128xf32>
    %284 = arith.addf %280, %283 : vector<8x128xf32>
    %c55 = arith.constant 55 : index
    %285 = memref.load %arg1[%c55] : memref<234xf32, #tpu.memory_space<smem>>
    %286 = vector.broadcast %285 : f32 to vector<8x128xf32>
    %287 = arith.mulf %286, %13 : vector<8x128xf32>
    %288 = arith.addf %284, %287 : vector<8x128xf32>
    %c77 = arith.constant 77 : index
    %289 = memref.load %arg1[%c77] : memref<234xf32, #tpu.memory_space<smem>>
    %290 = vector.broadcast %289 : f32 to vector<8x128xf32>
    %291 = arith.addf %288, %290 : vector<8x128xf32>
    %cst_20 = arith.constant 0.000000e+00 : f32
    %292 = vector.broadcast %cst_20 : f32 to vector<8x128xf32>
    %293 = arith.maximumf %291, %292 : vector<8x128xf32>
    %c56 = arith.constant 56 : index
    %294 = memref.load %arg1[%c56] : memref<234xf32, #tpu.memory_space<smem>>
    %295 = vector.broadcast %294 : f32 to vector<8x128xf32>
    %296 = arith.mulf %295, %4 : vector<8x128xf32>
    %c57 = arith.constant 57 : index
    %297 = memref.load %arg1[%c57] : memref<234xf32, #tpu.memory_space<smem>>
    %298 = vector.broadcast %297 : f32 to vector<8x128xf32>
    %299 = arith.mulf %298, %7 : vector<8x128xf32>
    %300 = arith.addf %296, %299 : vector<8x128xf32>
    %c58 = arith.constant 58 : index
    %301 = memref.load %arg1[%c58] : memref<234xf32, #tpu.memory_space<smem>>
    %302 = vector.broadcast %301 : f32 to vector<8x128xf32>
    %303 = arith.mulf %302, %10 : vector<8x128xf32>
    %304 = arith.addf %300, %303 : vector<8x128xf32>
    %c59 = arith.constant 59 : index
    %305 = memref.load %arg1[%c59] : memref<234xf32, #tpu.memory_space<smem>>
    %306 = vector.broadcast %305 : f32 to vector<8x128xf32>
    %307 = arith.mulf %306, %13 : vector<8x128xf32>
    %308 = arith.addf %304, %307 : vector<8x128xf32>
    %c78 = arith.constant 78 : index
    %309 = memref.load %arg1[%c78] : memref<234xf32, #tpu.memory_space<smem>>
    %310 = vector.broadcast %309 : f32 to vector<8x128xf32>
    %311 = arith.addf %308, %310 : vector<8x128xf32>
    %cst_21 = arith.constant 0.000000e+00 : f32
    %312 = vector.broadcast %cst_21 : f32 to vector<8x128xf32>
    %313 = arith.maximumf %311, %312 : vector<8x128xf32>
    %c60 = arith.constant 60 : index
    %314 = memref.load %arg1[%c60] : memref<234xf32, #tpu.memory_space<smem>>
    %315 = vector.broadcast %314 : f32 to vector<8x128xf32>
    %316 = arith.mulf %315, %4 : vector<8x128xf32>
    %c61 = arith.constant 61 : index
    %317 = memref.load %arg1[%c61] : memref<234xf32, #tpu.memory_space<smem>>
    %318 = vector.broadcast %317 : f32 to vector<8x128xf32>
    %319 = arith.mulf %318, %7 : vector<8x128xf32>
    %320 = arith.addf %316, %319 : vector<8x128xf32>
    %c62 = arith.constant 62 : index
    %321 = memref.load %arg1[%c62] : memref<234xf32, #tpu.memory_space<smem>>
    %322 = vector.broadcast %321 : f32 to vector<8x128xf32>
    %323 = arith.mulf %322, %10 : vector<8x128xf32>
    %324 = arith.addf %320, %323 : vector<8x128xf32>
    %c63 = arith.constant 63 : index
    %325 = memref.load %arg1[%c63] : memref<234xf32, #tpu.memory_space<smem>>
    %326 = vector.broadcast %325 : f32 to vector<8x128xf32>
    %327 = arith.mulf %326, %13 : vector<8x128xf32>
    %328 = arith.addf %324, %327 : vector<8x128xf32>
    %c79 = arith.constant 79 : index
    %329 = memref.load %arg1[%c79] : memref<234xf32, #tpu.memory_space<smem>>
    %330 = vector.broadcast %329 : f32 to vector<8x128xf32>
    %331 = arith.addf %328, %330 : vector<8x128xf32>
    %cst_22 = arith.constant 0.000000e+00 : f32
    %332 = vector.broadcast %cst_22 : f32 to vector<8x128xf32>
    %333 = arith.maximumf %331, %332 : vector<8x128xf32>
    %c80 = arith.constant 80 : index
    %334 = memref.load %arg1[%c80] : memref<234xf32, #tpu.memory_space<smem>>
    %335 = vector.broadcast %334 : f32 to vector<8x128xf32>
    %336 = arith.mulf %335, %33 : vector<8x128xf32>
    %c81 = arith.constant 81 : index
    %337 = memref.load %arg1[%c81] : memref<234xf32, #tpu.memory_space<smem>>
    %338 = vector.broadcast %337 : f32 to vector<8x128xf32>
    %339 = arith.mulf %338, %53 : vector<8x128xf32>
    %340 = arith.addf %336, %339 : vector<8x128xf32>
    %c82 = arith.constant 82 : index
    %341 = memref.load %arg1[%c82] : memref<234xf32, #tpu.memory_space<smem>>
    %342 = vector.broadcast %341 : f32 to vector<8x128xf32>
    %343 = arith.mulf %342, %73 : vector<8x128xf32>
    %344 = arith.addf %340, %343 : vector<8x128xf32>
    %c83 = arith.constant 83 : index
    %345 = memref.load %arg1[%c83] : memref<234xf32, #tpu.memory_space<smem>>
    %346 = vector.broadcast %345 : f32 to vector<8x128xf32>
    %347 = arith.mulf %346, %93 : vector<8x128xf32>
    %348 = arith.addf %344, %347 : vector<8x128xf32>
    %c84 = arith.constant 84 : index
    %349 = memref.load %arg1[%c84] : memref<234xf32, #tpu.memory_space<smem>>
    %350 = vector.broadcast %349 : f32 to vector<8x128xf32>
    %351 = arith.mulf %350, %113 : vector<8x128xf32>
    %352 = arith.addf %348, %351 : vector<8x128xf32>
    %c85 = arith.constant 85 : index
    %353 = memref.load %arg1[%c85] : memref<234xf32, #tpu.memory_space<smem>>
    %354 = vector.broadcast %353 : f32 to vector<8x128xf32>
    %355 = arith.mulf %354, %133 : vector<8x128xf32>
    %356 = arith.addf %352, %355 : vector<8x128xf32>
    %c86 = arith.constant 86 : index
    %357 = memref.load %arg1[%c86] : memref<234xf32, #tpu.memory_space<smem>>
    %358 = vector.broadcast %357 : f32 to vector<8x128xf32>
    %359 = arith.mulf %358, %153 : vector<8x128xf32>
    %360 = arith.addf %356, %359 : vector<8x128xf32>
    %c87 = arith.constant 87 : index
    %361 = memref.load %arg1[%c87] : memref<234xf32, #tpu.memory_space<smem>>
    %362 = vector.broadcast %361 : f32 to vector<8x128xf32>
    %363 = arith.mulf %362, %173 : vector<8x128xf32>
    %364 = arith.addf %360, %363 : vector<8x128xf32>
    %c88 = arith.constant 88 : index
    %365 = memref.load %arg1[%c88] : memref<234xf32, #tpu.memory_space<smem>>
    %366 = vector.broadcast %365 : f32 to vector<8x128xf32>
    %367 = arith.mulf %366, %193 : vector<8x128xf32>
    %368 = arith.addf %364, %367 : vector<8x128xf32>
    %c89 = arith.constant 89 : index
    %369 = memref.load %arg1[%c89] : memref<234xf32, #tpu.memory_space<smem>>
    %370 = vector.broadcast %369 : f32 to vector<8x128xf32>
    %371 = arith.mulf %370, %213 : vector<8x128xf32>
    %372 = arith.addf %368, %371 : vector<8x128xf32>
    %c90 = arith.constant 90 : index
    %373 = memref.load %arg1[%c90] : memref<234xf32, #tpu.memory_space<smem>>
    %374 = vector.broadcast %373 : f32 to vector<8x128xf32>
    %375 = arith.mulf %374, %233 : vector<8x128xf32>
    %376 = arith.addf %372, %375 : vector<8x128xf32>
    %c91 = arith.constant 91 : index
    %377 = memref.load %arg1[%c91] : memref<234xf32, #tpu.memory_space<smem>>
    %378 = vector.broadcast %377 : f32 to vector<8x128xf32>
    %379 = arith.mulf %378, %253 : vector<8x128xf32>
    %380 = arith.addf %376, %379 : vector<8x128xf32>
    %c92 = arith.constant 92 : index
    %381 = memref.load %arg1[%c92] : memref<234xf32, #tpu.memory_space<smem>>
    %382 = vector.broadcast %381 : f32 to vector<8x128xf32>
    %383 = arith.mulf %382, %273 : vector<8x128xf32>
    %384 = arith.addf %380, %383 : vector<8x128xf32>
    %c93 = arith.constant 93 : index
    %385 = memref.load %arg1[%c93] : memref<234xf32, #tpu.memory_space<smem>>
    %386 = vector.broadcast %385 : f32 to vector<8x128xf32>
    %387 = arith.mulf %386, %293 : vector<8x128xf32>
    %388 = arith.addf %384, %387 : vector<8x128xf32>
    %c94 = arith.constant 94 : index
    %389 = memref.load %arg1[%c94] : memref<234xf32, #tpu.memory_space<smem>>
    %390 = vector.broadcast %389 : f32 to vector<8x128xf32>
    %391 = arith.mulf %390, %313 : vector<8x128xf32>
    %392 = arith.addf %388, %391 : vector<8x128xf32>
    %c95 = arith.constant 95 : index
    %393 = memref.load %arg1[%c95] : memref<234xf32, #tpu.memory_space<smem>>
    %394 = vector.broadcast %393 : f32 to vector<8x128xf32>
    %395 = arith.mulf %394, %333 : vector<8x128xf32>
    %396 = arith.addf %392, %395 : vector<8x128xf32>
    %c208 = arith.constant 208 : index
    %397 = memref.load %arg1[%c208] : memref<234xf32, #tpu.memory_space<smem>>
    %398 = vector.broadcast %397 : f32 to vector<8x128xf32>
    %399 = arith.addf %396, %398 : vector<8x128xf32>
    %cst_23 = arith.constant 0.000000e+00 : f32
    %400 = vector.broadcast %cst_23 : f32 to vector<8x128xf32>
    %401 = arith.maximumf %399, %400 : vector<8x128xf32>
    %c96 = arith.constant 96 : index
    %402 = memref.load %arg1[%c96] : memref<234xf32, #tpu.memory_space<smem>>
    %403 = vector.broadcast %402 : f32 to vector<8x128xf32>
    %404 = arith.mulf %403, %33 : vector<8x128xf32>
    %c97 = arith.constant 97 : index
    %405 = memref.load %arg1[%c97] : memref<234xf32, #tpu.memory_space<smem>>
    %406 = vector.broadcast %405 : f32 to vector<8x128xf32>
    %407 = arith.mulf %406, %53 : vector<8x128xf32>
    %408 = arith.addf %404, %407 : vector<8x128xf32>
    %c98 = arith.constant 98 : index
    %409 = memref.load %arg1[%c98] : memref<234xf32, #tpu.memory_space<smem>>
    %410 = vector.broadcast %409 : f32 to vector<8x128xf32>
    %411 = arith.mulf %410, %73 : vector<8x128xf32>
    %412 = arith.addf %408, %411 : vector<8x128xf32>
    %c99 = arith.constant 99 : index
    %413 = memref.load %arg1[%c99] : memref<234xf32, #tpu.memory_space<smem>>
    %414 = vector.broadcast %413 : f32 to vector<8x128xf32>
    %415 = arith.mulf %414, %93 : vector<8x128xf32>
    %416 = arith.addf %412, %415 : vector<8x128xf32>
    %c100 = arith.constant 100 : index
    %417 = memref.load %arg1[%c100] : memref<234xf32, #tpu.memory_space<smem>>
    %418 = vector.broadcast %417 : f32 to vector<8x128xf32>
    %419 = arith.mulf %418, %113 : vector<8x128xf32>
    %420 = arith.addf %416, %419 : vector<8x128xf32>
    %c101 = arith.constant 101 : index
    %421 = memref.load %arg1[%c101] : memref<234xf32, #tpu.memory_space<smem>>
    %422 = vector.broadcast %421 : f32 to vector<8x128xf32>
    %423 = arith.mulf %422, %133 : vector<8x128xf32>
    %424 = arith.addf %420, %423 : vector<8x128xf32>
    %c102 = arith.constant 102 : index
    %425 = memref.load %arg1[%c102] : memref<234xf32, #tpu.memory_space<smem>>
    %426 = vector.broadcast %425 : f32 to vector<8x128xf32>
    %427 = arith.mulf %426, %153 : vector<8x128xf32>
    %428 = arith.addf %424, %427 : vector<8x128xf32>
    %c103 = arith.constant 103 : index
    %429 = memref.load %arg1[%c103] : memref<234xf32, #tpu.memory_space<smem>>
    %430 = vector.broadcast %429 : f32 to vector<8x128xf32>
    %431 = arith.mulf %430, %173 : vector<8x128xf32>
    %432 = arith.addf %428, %431 : vector<8x128xf32>
    %c104 = arith.constant 104 : index
    %433 = memref.load %arg1[%c104] : memref<234xf32, #tpu.memory_space<smem>>
    %434 = vector.broadcast %433 : f32 to vector<8x128xf32>
    %435 = arith.mulf %434, %193 : vector<8x128xf32>
    %436 = arith.addf %432, %435 : vector<8x128xf32>
    %c105 = arith.constant 105 : index
    %437 = memref.load %arg1[%c105] : memref<234xf32, #tpu.memory_space<smem>>
    %438 = vector.broadcast %437 : f32 to vector<8x128xf32>
    %439 = arith.mulf %438, %213 : vector<8x128xf32>
    %440 = arith.addf %436, %439 : vector<8x128xf32>
    %c106 = arith.constant 106 : index
    %441 = memref.load %arg1[%c106] : memref<234xf32, #tpu.memory_space<smem>>
    %442 = vector.broadcast %441 : f32 to vector<8x128xf32>
    %443 = arith.mulf %442, %233 : vector<8x128xf32>
    %444 = arith.addf %440, %443 : vector<8x128xf32>
    %c107 = arith.constant 107 : index
    %445 = memref.load %arg1[%c107] : memref<234xf32, #tpu.memory_space<smem>>
    %446 = vector.broadcast %445 : f32 to vector<8x128xf32>
    %447 = arith.mulf %446, %253 : vector<8x128xf32>
    %448 = arith.addf %444, %447 : vector<8x128xf32>
    %c108 = arith.constant 108 : index
    %449 = memref.load %arg1[%c108] : memref<234xf32, #tpu.memory_space<smem>>
    %450 = vector.broadcast %449 : f32 to vector<8x128xf32>
    %451 = arith.mulf %450, %273 : vector<8x128xf32>
    %452 = arith.addf %448, %451 : vector<8x128xf32>
    %c109 = arith.constant 109 : index
    %453 = memref.load %arg1[%c109] : memref<234xf32, #tpu.memory_space<smem>>
    %454 = vector.broadcast %453 : f32 to vector<8x128xf32>
    %455 = arith.mulf %454, %293 : vector<8x128xf32>
    %456 = arith.addf %452, %455 : vector<8x128xf32>
    %c110 = arith.constant 110 : index
    %457 = memref.load %arg1[%c110] : memref<234xf32, #tpu.memory_space<smem>>
    %458 = vector.broadcast %457 : f32 to vector<8x128xf32>
    %459 = arith.mulf %458, %313 : vector<8x128xf32>
    %460 = arith.addf %456, %459 : vector<8x128xf32>
    %c111 = arith.constant 111 : index
    %461 = memref.load %arg1[%c111] : memref<234xf32, #tpu.memory_space<smem>>
    %462 = vector.broadcast %461 : f32 to vector<8x128xf32>
    %463 = arith.mulf %462, %333 : vector<8x128xf32>
    %464 = arith.addf %460, %463 : vector<8x128xf32>
    %c209 = arith.constant 209 : index
    %465 = memref.load %arg1[%c209] : memref<234xf32, #tpu.memory_space<smem>>
    %466 = vector.broadcast %465 : f32 to vector<8x128xf32>
    %467 = arith.addf %464, %466 : vector<8x128xf32>
    %cst_24 = arith.constant 0.000000e+00 : f32
    %468 = vector.broadcast %cst_24 : f32 to vector<8x128xf32>
    %469 = arith.maximumf %467, %468 : vector<8x128xf32>
    %c112 = arith.constant 112 : index
    %470 = memref.load %arg1[%c112] : memref<234xf32, #tpu.memory_space<smem>>
    %471 = vector.broadcast %470 : f32 to vector<8x128xf32>
    %472 = arith.mulf %471, %33 : vector<8x128xf32>
    %c113 = arith.constant 113 : index
    %473 = memref.load %arg1[%c113] : memref<234xf32, #tpu.memory_space<smem>>
    %474 = vector.broadcast %473 : f32 to vector<8x128xf32>
    %475 = arith.mulf %474, %53 : vector<8x128xf32>
    %476 = arith.addf %472, %475 : vector<8x128xf32>
    %c114 = arith.constant 114 : index
    %477 = memref.load %arg1[%c114] : memref<234xf32, #tpu.memory_space<smem>>
    %478 = vector.broadcast %477 : f32 to vector<8x128xf32>
    %479 = arith.mulf %478, %73 : vector<8x128xf32>
    %480 = arith.addf %476, %479 : vector<8x128xf32>
    %c115 = arith.constant 115 : index
    %481 = memref.load %arg1[%c115] : memref<234xf32, #tpu.memory_space<smem>>
    %482 = vector.broadcast %481 : f32 to vector<8x128xf32>
    %483 = arith.mulf %482, %93 : vector<8x128xf32>
    %484 = arith.addf %480, %483 : vector<8x128xf32>
    %c116 = arith.constant 116 : index
    %485 = memref.load %arg1[%c116] : memref<234xf32, #tpu.memory_space<smem>>
    %486 = vector.broadcast %485 : f32 to vector<8x128xf32>
    %487 = arith.mulf %486, %113 : vector<8x128xf32>
    %488 = arith.addf %484, %487 : vector<8x128xf32>
    %c117 = arith.constant 117 : index
    %489 = memref.load %arg1[%c117] : memref<234xf32, #tpu.memory_space<smem>>
    %490 = vector.broadcast %489 : f32 to vector<8x128xf32>
    %491 = arith.mulf %490, %133 : vector<8x128xf32>
    %492 = arith.addf %488, %491 : vector<8x128xf32>
    %c118 = arith.constant 118 : index
    %493 = memref.load %arg1[%c118] : memref<234xf32, #tpu.memory_space<smem>>
    %494 = vector.broadcast %493 : f32 to vector<8x128xf32>
    %495 = arith.mulf %494, %153 : vector<8x128xf32>
    %496 = arith.addf %492, %495 : vector<8x128xf32>
    %c119 = arith.constant 119 : index
    %497 = memref.load %arg1[%c119] : memref<234xf32, #tpu.memory_space<smem>>
    %498 = vector.broadcast %497 : f32 to vector<8x128xf32>
    %499 = arith.mulf %498, %173 : vector<8x128xf32>
    %500 = arith.addf %496, %499 : vector<8x128xf32>
    %c120 = arith.constant 120 : index
    %501 = memref.load %arg1[%c120] : memref<234xf32, #tpu.memory_space<smem>>
    %502 = vector.broadcast %501 : f32 to vector<8x128xf32>
    %503 = arith.mulf %502, %193 : vector<8x128xf32>
    %504 = arith.addf %500, %503 : vector<8x128xf32>
    %c121 = arith.constant 121 : index
    %505 = memref.load %arg1[%c121] : memref<234xf32, #tpu.memory_space<smem>>
    %506 = vector.broadcast %505 : f32 to vector<8x128xf32>
    %507 = arith.mulf %506, %213 : vector<8x128xf32>
    %508 = arith.addf %504, %507 : vector<8x128xf32>
    %c122 = arith.constant 122 : index
    %509 = memref.load %arg1[%c122] : memref<234xf32, #tpu.memory_space<smem>>
    %510 = vector.broadcast %509 : f32 to vector<8x128xf32>
    %511 = arith.mulf %510, %233 : vector<8x128xf32>
    %512 = arith.addf %508, %511 : vector<8x128xf32>
    %c123 = arith.constant 123 : index
    %513 = memref.load %arg1[%c123] : memref<234xf32, #tpu.memory_space<smem>>
    %514 = vector.broadcast %513 : f32 to vector<8x128xf32>
    %515 = arith.mulf %514, %253 : vector<8x128xf32>
    %516 = arith.addf %512, %515 : vector<8x128xf32>
    %c124 = arith.constant 124 : index
    %517 = memref.load %arg1[%c124] : memref<234xf32, #tpu.memory_space<smem>>
    %518 = vector.broadcast %517 : f32 to vector<8x128xf32>
    %519 = arith.mulf %518, %273 : vector<8x128xf32>
    %520 = arith.addf %516, %519 : vector<8x128xf32>
    %c125 = arith.constant 125 : index
    %521 = memref.load %arg1[%c125] : memref<234xf32, #tpu.memory_space<smem>>
    %522 = vector.broadcast %521 : f32 to vector<8x128xf32>
    %523 = arith.mulf %522, %293 : vector<8x128xf32>
    %524 = arith.addf %520, %523 : vector<8x128xf32>
    %c126 = arith.constant 126 : index
    %525 = memref.load %arg1[%c126] : memref<234xf32, #tpu.memory_space<smem>>
    %526 = vector.broadcast %525 : f32 to vector<8x128xf32>
    %527 = arith.mulf %526, %313 : vector<8x128xf32>
    %528 = arith.addf %524, %527 : vector<8x128xf32>
    %c127 = arith.constant 127 : index
    %529 = memref.load %arg1[%c127] : memref<234xf32, #tpu.memory_space<smem>>
    %530 = vector.broadcast %529 : f32 to vector<8x128xf32>
    %531 = arith.mulf %530, %333 : vector<8x128xf32>
    %532 = arith.addf %528, %531 : vector<8x128xf32>
    %c210 = arith.constant 210 : index
    %533 = memref.load %arg1[%c210] : memref<234xf32, #tpu.memory_space<smem>>
    %534 = vector.broadcast %533 : f32 to vector<8x128xf32>
    %535 = arith.addf %532, %534 : vector<8x128xf32>
    %cst_25 = arith.constant 0.000000e+00 : f32
    %536 = vector.broadcast %cst_25 : f32 to vector<8x128xf32>
    %537 = arith.maximumf %535, %536 : vector<8x128xf32>
    %c128 = arith.constant 128 : index
    %538 = memref.load %arg1[%c128] : memref<234xf32, #tpu.memory_space<smem>>
    %539 = vector.broadcast %538 : f32 to vector<8x128xf32>
    %540 = arith.mulf %539, %33 : vector<8x128xf32>
    %c129 = arith.constant 129 : index
    %541 = memref.load %arg1[%c129] : memref<234xf32, #tpu.memory_space<smem>>
    %542 = vector.broadcast %541 : f32 to vector<8x128xf32>
    %543 = arith.mulf %542, %53 : vector<8x128xf32>
    %544 = arith.addf %540, %543 : vector<8x128xf32>
    %c130 = arith.constant 130 : index
    %545 = memref.load %arg1[%c130] : memref<234xf32, #tpu.memory_space<smem>>
    %546 = vector.broadcast %545 : f32 to vector<8x128xf32>
    %547 = arith.mulf %546, %73 : vector<8x128xf32>
    %548 = arith.addf %544, %547 : vector<8x128xf32>
    %c131 = arith.constant 131 : index
    %549 = memref.load %arg1[%c131] : memref<234xf32, #tpu.memory_space<smem>>
    %550 = vector.broadcast %549 : f32 to vector<8x128xf32>
    %551 = arith.mulf %550, %93 : vector<8x128xf32>
    %552 = arith.addf %548, %551 : vector<8x128xf32>
    %c132 = arith.constant 132 : index
    %553 = memref.load %arg1[%c132] : memref<234xf32, #tpu.memory_space<smem>>
    %554 = vector.broadcast %553 : f32 to vector<8x128xf32>
    %555 = arith.mulf %554, %113 : vector<8x128xf32>
    %556 = arith.addf %552, %555 : vector<8x128xf32>
    %c133 = arith.constant 133 : index
    %557 = memref.load %arg1[%c133] : memref<234xf32, #tpu.memory_space<smem>>
    %558 = vector.broadcast %557 : f32 to vector<8x128xf32>
    %559 = arith.mulf %558, %133 : vector<8x128xf32>
    %560 = arith.addf %556, %559 : vector<8x128xf32>
    %c134 = arith.constant 134 : index
    %561 = memref.load %arg1[%c134] : memref<234xf32, #tpu.memory_space<smem>>
    %562 = vector.broadcast %561 : f32 to vector<8x128xf32>
    %563 = arith.mulf %562, %153 : vector<8x128xf32>
    %564 = arith.addf %560, %563 : vector<8x128xf32>
    %c135 = arith.constant 135 : index
    %565 = memref.load %arg1[%c135] : memref<234xf32, #tpu.memory_space<smem>>
    %566 = vector.broadcast %565 : f32 to vector<8x128xf32>
    %567 = arith.mulf %566, %173 : vector<8x128xf32>
    %568 = arith.addf %564, %567 : vector<8x128xf32>
    %c136 = arith.constant 136 : index
    %569 = memref.load %arg1[%c136] : memref<234xf32, #tpu.memory_space<smem>>
    %570 = vector.broadcast %569 : f32 to vector<8x128xf32>
    %571 = arith.mulf %570, %193 : vector<8x128xf32>
    %572 = arith.addf %568, %571 : vector<8x128xf32>
    %c137 = arith.constant 137 : index
    %573 = memref.load %arg1[%c137] : memref<234xf32, #tpu.memory_space<smem>>
    %574 = vector.broadcast %573 : f32 to vector<8x128xf32>
    %575 = arith.mulf %574, %213 : vector<8x128xf32>
    %576 = arith.addf %572, %575 : vector<8x128xf32>
    %c138 = arith.constant 138 : index
    %577 = memref.load %arg1[%c138] : memref<234xf32, #tpu.memory_space<smem>>
    %578 = vector.broadcast %577 : f32 to vector<8x128xf32>
    %579 = arith.mulf %578, %233 : vector<8x128xf32>
    %580 = arith.addf %576, %579 : vector<8x128xf32>
    %c139 = arith.constant 139 : index
    %581 = memref.load %arg1[%c139] : memref<234xf32, #tpu.memory_space<smem>>
    %582 = vector.broadcast %581 : f32 to vector<8x128xf32>
    %583 = arith.mulf %582, %253 : vector<8x128xf32>
    %584 = arith.addf %580, %583 : vector<8x128xf32>
    %c140 = arith.constant 140 : index
    %585 = memref.load %arg1[%c140] : memref<234xf32, #tpu.memory_space<smem>>
    %586 = vector.broadcast %585 : f32 to vector<8x128xf32>
    %587 = arith.mulf %586, %273 : vector<8x128xf32>
    %588 = arith.addf %584, %587 : vector<8x128xf32>
    %c141 = arith.constant 141 : index
    %589 = memref.load %arg1[%c141] : memref<234xf32, #tpu.memory_space<smem>>
    %590 = vector.broadcast %589 : f32 to vector<8x128xf32>
    %591 = arith.mulf %590, %293 : vector<8x128xf32>
    %592 = arith.addf %588, %591 : vector<8x128xf32>
    %c142 = arith.constant 142 : index
    %593 = memref.load %arg1[%c142] : memref<234xf32, #tpu.memory_space<smem>>
    %594 = vector.broadcast %593 : f32 to vector<8x128xf32>
    %595 = arith.mulf %594, %313 : vector<8x128xf32>
    %596 = arith.addf %592, %595 : vector<8x128xf32>
    %c143 = arith.constant 143 : index
    %597 = memref.load %arg1[%c143] : memref<234xf32, #tpu.memory_space<smem>>
    %598 = vector.broadcast %597 : f32 to vector<8x128xf32>
    %599 = arith.mulf %598, %333 : vector<8x128xf32>
    %600 = arith.addf %596, %599 : vector<8x128xf32>
    %c211 = arith.constant 211 : index
    %601 = memref.load %arg1[%c211] : memref<234xf32, #tpu.memory_space<smem>>
    %602 = vector.broadcast %601 : f32 to vector<8x128xf32>
    %603 = arith.addf %600, %602 : vector<8x128xf32>
    %cst_26 = arith.constant 0.000000e+00 : f32
    %604 = vector.broadcast %cst_26 : f32 to vector<8x128xf32>
    %605 = arith.maximumf %603, %604 : vector<8x128xf32>
    %c144 = arith.constant 144 : index
    %606 = memref.load %arg1[%c144] : memref<234xf32, #tpu.memory_space<smem>>
    %607 = vector.broadcast %606 : f32 to vector<8x128xf32>
    %608 = arith.mulf %607, %33 : vector<8x128xf32>
    %c145 = arith.constant 145 : index
    %609 = memref.load %arg1[%c145] : memref<234xf32, #tpu.memory_space<smem>>
    %610 = vector.broadcast %609 : f32 to vector<8x128xf32>
    %611 = arith.mulf %610, %53 : vector<8x128xf32>
    %612 = arith.addf %608, %611 : vector<8x128xf32>
    %c146 = arith.constant 146 : index
    %613 = memref.load %arg1[%c146] : memref<234xf32, #tpu.memory_space<smem>>
    %614 = vector.broadcast %613 : f32 to vector<8x128xf32>
    %615 = arith.mulf %614, %73 : vector<8x128xf32>
    %616 = arith.addf %612, %615 : vector<8x128xf32>
    %c147 = arith.constant 147 : index
    %617 = memref.load %arg1[%c147] : memref<234xf32, #tpu.memory_space<smem>>
    %618 = vector.broadcast %617 : f32 to vector<8x128xf32>
    %619 = arith.mulf %618, %93 : vector<8x128xf32>
    %620 = arith.addf %616, %619 : vector<8x128xf32>
    %c148 = arith.constant 148 : index
    %621 = memref.load %arg1[%c148] : memref<234xf32, #tpu.memory_space<smem>>
    %622 = vector.broadcast %621 : f32 to vector<8x128xf32>
    %623 = arith.mulf %622, %113 : vector<8x128xf32>
    %624 = arith.addf %620, %623 : vector<8x128xf32>
    %c149 = arith.constant 149 : index
    %625 = memref.load %arg1[%c149] : memref<234xf32, #tpu.memory_space<smem>>
    %626 = vector.broadcast %625 : f32 to vector<8x128xf32>
    %627 = arith.mulf %626, %133 : vector<8x128xf32>
    %628 = arith.addf %624, %627 : vector<8x128xf32>
    %c150 = arith.constant 150 : index
    %629 = memref.load %arg1[%c150] : memref<234xf32, #tpu.memory_space<smem>>
    %630 = vector.broadcast %629 : f32 to vector<8x128xf32>
    %631 = arith.mulf %630, %153 : vector<8x128xf32>
    %632 = arith.addf %628, %631 : vector<8x128xf32>
    %c151 = arith.constant 151 : index
    %633 = memref.load %arg1[%c151] : memref<234xf32, #tpu.memory_space<smem>>
    %634 = vector.broadcast %633 : f32 to vector<8x128xf32>
    %635 = arith.mulf %634, %173 : vector<8x128xf32>
    %636 = arith.addf %632, %635 : vector<8x128xf32>
    %c152 = arith.constant 152 : index
    %637 = memref.load %arg1[%c152] : memref<234xf32, #tpu.memory_space<smem>>
    %638 = vector.broadcast %637 : f32 to vector<8x128xf32>
    %639 = arith.mulf %638, %193 : vector<8x128xf32>
    %640 = arith.addf %636, %639 : vector<8x128xf32>
    %c153 = arith.constant 153 : index
    %641 = memref.load %arg1[%c153] : memref<234xf32, #tpu.memory_space<smem>>
    %642 = vector.broadcast %641 : f32 to vector<8x128xf32>
    %643 = arith.mulf %642, %213 : vector<8x128xf32>
    %644 = arith.addf %640, %643 : vector<8x128xf32>
    %c154 = arith.constant 154 : index
    %645 = memref.load %arg1[%c154] : memref<234xf32, #tpu.memory_space<smem>>
    %646 = vector.broadcast %645 : f32 to vector<8x128xf32>
    %647 = arith.mulf %646, %233 : vector<8x128xf32>
    %648 = arith.addf %644, %647 : vector<8x128xf32>
    %c155 = arith.constant 155 : index
    %649 = memref.load %arg1[%c155] : memref<234xf32, #tpu.memory_space<smem>>
    %650 = vector.broadcast %649 : f32 to vector<8x128xf32>
    %651 = arith.mulf %650, %253 : vector<8x128xf32>
    %652 = arith.addf %648, %651 : vector<8x128xf32>
    %c156 = arith.constant 156 : index
    %653 = memref.load %arg1[%c156] : memref<234xf32, #tpu.memory_space<smem>>
    %654 = vector.broadcast %653 : f32 to vector<8x128xf32>
    %655 = arith.mulf %654, %273 : vector<8x128xf32>
    %656 = arith.addf %652, %655 : vector<8x128xf32>
    %c157 = arith.constant 157 : index
    %657 = memref.load %arg1[%c157] : memref<234xf32, #tpu.memory_space<smem>>
    %658 = vector.broadcast %657 : f32 to vector<8x128xf32>
    %659 = arith.mulf %658, %293 : vector<8x128xf32>
    %660 = arith.addf %656, %659 : vector<8x128xf32>
    %c158 = arith.constant 158 : index
    %661 = memref.load %arg1[%c158] : memref<234xf32, #tpu.memory_space<smem>>
    %662 = vector.broadcast %661 : f32 to vector<8x128xf32>
    %663 = arith.mulf %662, %313 : vector<8x128xf32>
    %664 = arith.addf %660, %663 : vector<8x128xf32>
    %c159 = arith.constant 159 : index
    %665 = memref.load %arg1[%c159] : memref<234xf32, #tpu.memory_space<smem>>
    %666 = vector.broadcast %665 : f32 to vector<8x128xf32>
    %667 = arith.mulf %666, %333 : vector<8x128xf32>
    %668 = arith.addf %664, %667 : vector<8x128xf32>
    %c212 = arith.constant 212 : index
    %669 = memref.load %arg1[%c212] : memref<234xf32, #tpu.memory_space<smem>>
    %670 = vector.broadcast %669 : f32 to vector<8x128xf32>
    %671 = arith.addf %668, %670 : vector<8x128xf32>
    %cst_27 = arith.constant 0.000000e+00 : f32
    %672 = vector.broadcast %cst_27 : f32 to vector<8x128xf32>
    %673 = arith.maximumf %671, %672 : vector<8x128xf32>
    %c160 = arith.constant 160 : index
    %674 = memref.load %arg1[%c160] : memref<234xf32, #tpu.memory_space<smem>>
    %675 = vector.broadcast %674 : f32 to vector<8x128xf32>
    %676 = arith.mulf %675, %33 : vector<8x128xf32>
    %c161 = arith.constant 161 : index
    %677 = memref.load %arg1[%c161] : memref<234xf32, #tpu.memory_space<smem>>
    %678 = vector.broadcast %677 : f32 to vector<8x128xf32>
    %679 = arith.mulf %678, %53 : vector<8x128xf32>
    %680 = arith.addf %676, %679 : vector<8x128xf32>
    %c162 = arith.constant 162 : index
    %681 = memref.load %arg1[%c162] : memref<234xf32, #tpu.memory_space<smem>>
    %682 = vector.broadcast %681 : f32 to vector<8x128xf32>
    %683 = arith.mulf %682, %73 : vector<8x128xf32>
    %684 = arith.addf %680, %683 : vector<8x128xf32>
    %c163 = arith.constant 163 : index
    %685 = memref.load %arg1[%c163] : memref<234xf32, #tpu.memory_space<smem>>
    %686 = vector.broadcast %685 : f32 to vector<8x128xf32>
    %687 = arith.mulf %686, %93 : vector<8x128xf32>
    %688 = arith.addf %684, %687 : vector<8x128xf32>
    %c164 = arith.constant 164 : index
    %689 = memref.load %arg1[%c164] : memref<234xf32, #tpu.memory_space<smem>>
    %690 = vector.broadcast %689 : f32 to vector<8x128xf32>
    %691 = arith.mulf %690, %113 : vector<8x128xf32>
    %692 = arith.addf %688, %691 : vector<8x128xf32>
    %c165 = arith.constant 165 : index
    %693 = memref.load %arg1[%c165] : memref<234xf32, #tpu.memory_space<smem>>
    %694 = vector.broadcast %693 : f32 to vector<8x128xf32>
    %695 = arith.mulf %694, %133 : vector<8x128xf32>
    %696 = arith.addf %692, %695 : vector<8x128xf32>
    %c166 = arith.constant 166 : index
    %697 = memref.load %arg1[%c166] : memref<234xf32, #tpu.memory_space<smem>>
    %698 = vector.broadcast %697 : f32 to vector<8x128xf32>
    %699 = arith.mulf %698, %153 : vector<8x128xf32>
    %700 = arith.addf %696, %699 : vector<8x128xf32>
    %c167 = arith.constant 167 : index
    %701 = memref.load %arg1[%c167] : memref<234xf32, #tpu.memory_space<smem>>
    %702 = vector.broadcast %701 : f32 to vector<8x128xf32>
    %703 = arith.mulf %702, %173 : vector<8x128xf32>
    %704 = arith.addf %700, %703 : vector<8x128xf32>
    %c168 = arith.constant 168 : index
    %705 = memref.load %arg1[%c168] : memref<234xf32, #tpu.memory_space<smem>>
    %706 = vector.broadcast %705 : f32 to vector<8x128xf32>
    %707 = arith.mulf %706, %193 : vector<8x128xf32>
    %708 = arith.addf %704, %707 : vector<8x128xf32>
    %c169 = arith.constant 169 : index
    %709 = memref.load %arg1[%c169] : memref<234xf32, #tpu.memory_space<smem>>
    %710 = vector.broadcast %709 : f32 to vector<8x128xf32>
    %711 = arith.mulf %710, %213 : vector<8x128xf32>
    %712 = arith.addf %708, %711 : vector<8x128xf32>
    %c170 = arith.constant 170 : index
    %713 = memref.load %arg1[%c170] : memref<234xf32, #tpu.memory_space<smem>>
    %714 = vector.broadcast %713 : f32 to vector<8x128xf32>
    %715 = arith.mulf %714, %233 : vector<8x128xf32>
    %716 = arith.addf %712, %715 : vector<8x128xf32>
    %c171 = arith.constant 171 : index
    %717 = memref.load %arg1[%c171] : memref<234xf32, #tpu.memory_space<smem>>
    %718 = vector.broadcast %717 : f32 to vector<8x128xf32>
    %719 = arith.mulf %718, %253 : vector<8x128xf32>
    %720 = arith.addf %716, %719 : vector<8x128xf32>
    %c172 = arith.constant 172 : index
    %721 = memref.load %arg1[%c172] : memref<234xf32, #tpu.memory_space<smem>>
    %722 = vector.broadcast %721 : f32 to vector<8x128xf32>
    %723 = arith.mulf %722, %273 : vector<8x128xf32>
    %724 = arith.addf %720, %723 : vector<8x128xf32>
    %c173 = arith.constant 173 : index
    %725 = memref.load %arg1[%c173] : memref<234xf32, #tpu.memory_space<smem>>
    %726 = vector.broadcast %725 : f32 to vector<8x128xf32>
    %727 = arith.mulf %726, %293 : vector<8x128xf32>
    %728 = arith.addf %724, %727 : vector<8x128xf32>
    %c174 = arith.constant 174 : index
    %729 = memref.load %arg1[%c174] : memref<234xf32, #tpu.memory_space<smem>>
    %730 = vector.broadcast %729 : f32 to vector<8x128xf32>
    %731 = arith.mulf %730, %313 : vector<8x128xf32>
    %732 = arith.addf %728, %731 : vector<8x128xf32>
    %c175 = arith.constant 175 : index
    %733 = memref.load %arg1[%c175] : memref<234xf32, #tpu.memory_space<smem>>
    %734 = vector.broadcast %733 : f32 to vector<8x128xf32>
    %735 = arith.mulf %734, %333 : vector<8x128xf32>
    %736 = arith.addf %732, %735 : vector<8x128xf32>
    %c213 = arith.constant 213 : index
    %737 = memref.load %arg1[%c213] : memref<234xf32, #tpu.memory_space<smem>>
    %738 = vector.broadcast %737 : f32 to vector<8x128xf32>
    %739 = arith.addf %736, %738 : vector<8x128xf32>
    %cst_28 = arith.constant 0.000000e+00 : f32
    %740 = vector.broadcast %cst_28 : f32 to vector<8x128xf32>
    %741 = arith.maximumf %739, %740 : vector<8x128xf32>
    %c176 = arith.constant 176 : index
    %742 = memref.load %arg1[%c176] : memref<234xf32, #tpu.memory_space<smem>>
    %743 = vector.broadcast %742 : f32 to vector<8x128xf32>
    %744 = arith.mulf %743, %33 : vector<8x128xf32>
    %c177 = arith.constant 177 : index
    %745 = memref.load %arg1[%c177] : memref<234xf32, #tpu.memory_space<smem>>
    %746 = vector.broadcast %745 : f32 to vector<8x128xf32>
    %747 = arith.mulf %746, %53 : vector<8x128xf32>
    %748 = arith.addf %744, %747 : vector<8x128xf32>
    %c178 = arith.constant 178 : index
    %749 = memref.load %arg1[%c178] : memref<234xf32, #tpu.memory_space<smem>>
    %750 = vector.broadcast %749 : f32 to vector<8x128xf32>
    %751 = arith.mulf %750, %73 : vector<8x128xf32>
    %752 = arith.addf %748, %751 : vector<8x128xf32>
    %c179 = arith.constant 179 : index
    %753 = memref.load %arg1[%c179] : memref<234xf32, #tpu.memory_space<smem>>
    %754 = vector.broadcast %753 : f32 to vector<8x128xf32>
    %755 = arith.mulf %754, %93 : vector<8x128xf32>
    %756 = arith.addf %752, %755 : vector<8x128xf32>
    %c180 = arith.constant 180 : index
    %757 = memref.load %arg1[%c180] : memref<234xf32, #tpu.memory_space<smem>>
    %758 = vector.broadcast %757 : f32 to vector<8x128xf32>
    %759 = arith.mulf %758, %113 : vector<8x128xf32>
    %760 = arith.addf %756, %759 : vector<8x128xf32>
    %c181 = arith.constant 181 : index
    %761 = memref.load %arg1[%c181] : memref<234xf32, #tpu.memory_space<smem>>
    %762 = vector.broadcast %761 : f32 to vector<8x128xf32>
    %763 = arith.mulf %762, %133 : vector<8x128xf32>
    %764 = arith.addf %760, %763 : vector<8x128xf32>
    %c182 = arith.constant 182 : index
    %765 = memref.load %arg1[%c182] : memref<234xf32, #tpu.memory_space<smem>>
    %766 = vector.broadcast %765 : f32 to vector<8x128xf32>
    %767 = arith.mulf %766, %153 : vector<8x128xf32>
    %768 = arith.addf %764, %767 : vector<8x128xf32>
    %c183 = arith.constant 183 : index
    %769 = memref.load %arg1[%c183] : memref<234xf32, #tpu.memory_space<smem>>
    %770 = vector.broadcast %769 : f32 to vector<8x128xf32>
    %771 = arith.mulf %770, %173 : vector<8x128xf32>
    %772 = arith.addf %768, %771 : vector<8x128xf32>
    %c184 = arith.constant 184 : index
    %773 = memref.load %arg1[%c184] : memref<234xf32, #tpu.memory_space<smem>>
    %774 = vector.broadcast %773 : f32 to vector<8x128xf32>
    %775 = arith.mulf %774, %193 : vector<8x128xf32>
    %776 = arith.addf %772, %775 : vector<8x128xf32>
    %c185 = arith.constant 185 : index
    %777 = memref.load %arg1[%c185] : memref<234xf32, #tpu.memory_space<smem>>
    %778 = vector.broadcast %777 : f32 to vector<8x128xf32>
    %779 = arith.mulf %778, %213 : vector<8x128xf32>
    %780 = arith.addf %776, %779 : vector<8x128xf32>
    %c186 = arith.constant 186 : index
    %781 = memref.load %arg1[%c186] : memref<234xf32, #tpu.memory_space<smem>>
    %782 = vector.broadcast %781 : f32 to vector<8x128xf32>
    %783 = arith.mulf %782, %233 : vector<8x128xf32>
    %784 = arith.addf %780, %783 : vector<8x128xf32>
    %c187 = arith.constant 187 : index
    %785 = memref.load %arg1[%c187] : memref<234xf32, #tpu.memory_space<smem>>
    %786 = vector.broadcast %785 : f32 to vector<8x128xf32>
    %787 = arith.mulf %786, %253 : vector<8x128xf32>
    %788 = arith.addf %784, %787 : vector<8x128xf32>
    %c188 = arith.constant 188 : index
    %789 = memref.load %arg1[%c188] : memref<234xf32, #tpu.memory_space<smem>>
    %790 = vector.broadcast %789 : f32 to vector<8x128xf32>
    %791 = arith.mulf %790, %273 : vector<8x128xf32>
    %792 = arith.addf %788, %791 : vector<8x128xf32>
    %c189 = arith.constant 189 : index
    %793 = memref.load %arg1[%c189] : memref<234xf32, #tpu.memory_space<smem>>
    %794 = vector.broadcast %793 : f32 to vector<8x128xf32>
    %795 = arith.mulf %794, %293 : vector<8x128xf32>
    %796 = arith.addf %792, %795 : vector<8x128xf32>
    %c190 = arith.constant 190 : index
    %797 = memref.load %arg1[%c190] : memref<234xf32, #tpu.memory_space<smem>>
    %798 = vector.broadcast %797 : f32 to vector<8x128xf32>
    %799 = arith.mulf %798, %313 : vector<8x128xf32>
    %800 = arith.addf %796, %799 : vector<8x128xf32>
    %c191 = arith.constant 191 : index
    %801 = memref.load %arg1[%c191] : memref<234xf32, #tpu.memory_space<smem>>
    %802 = vector.broadcast %801 : f32 to vector<8x128xf32>
    %803 = arith.mulf %802, %333 : vector<8x128xf32>
    %804 = arith.addf %800, %803 : vector<8x128xf32>
    %c214 = arith.constant 214 : index
    %805 = memref.load %arg1[%c214] : memref<234xf32, #tpu.memory_space<smem>>
    %806 = vector.broadcast %805 : f32 to vector<8x128xf32>
    %807 = arith.addf %804, %806 : vector<8x128xf32>
    %cst_29 = arith.constant 0.000000e+00 : f32
    %808 = vector.broadcast %cst_29 : f32 to vector<8x128xf32>
    %809 = arith.maximumf %807, %808 : vector<8x128xf32>
    %c192 = arith.constant 192 : index
    %810 = memref.load %arg1[%c192] : memref<234xf32, #tpu.memory_space<smem>>
    %811 = vector.broadcast %810 : f32 to vector<8x128xf32>
    %812 = arith.mulf %811, %33 : vector<8x128xf32>
    %c193 = arith.constant 193 : index
    %813 = memref.load %arg1[%c193] : memref<234xf32, #tpu.memory_space<smem>>
    %814 = vector.broadcast %813 : f32 to vector<8x128xf32>
    %815 = arith.mulf %814, %53 : vector<8x128xf32>
    %816 = arith.addf %812, %815 : vector<8x128xf32>
    %c194 = arith.constant 194 : index
    %817 = memref.load %arg1[%c194] : memref<234xf32, #tpu.memory_space<smem>>
    %818 = vector.broadcast %817 : f32 to vector<8x128xf32>
    %819 = arith.mulf %818, %73 : vector<8x128xf32>
    %820 = arith.addf %816, %819 : vector<8x128xf32>
    %c195 = arith.constant 195 : index
    %821 = memref.load %arg1[%c195] : memref<234xf32, #tpu.memory_space<smem>>
    %822 = vector.broadcast %821 : f32 to vector<8x128xf32>
    %823 = arith.mulf %822, %93 : vector<8x128xf32>
    %824 = arith.addf %820, %823 : vector<8x128xf32>
    %c196 = arith.constant 196 : index
    %825 = memref.load %arg1[%c196] : memref<234xf32, #tpu.memory_space<smem>>
    %826 = vector.broadcast %825 : f32 to vector<8x128xf32>
    %827 = arith.mulf %826, %113 : vector<8x128xf32>
    %828 = arith.addf %824, %827 : vector<8x128xf32>
    %c197 = arith.constant 197 : index
    %829 = memref.load %arg1[%c197] : memref<234xf32, #tpu.memory_space<smem>>
    %830 = vector.broadcast %829 : f32 to vector<8x128xf32>
    %831 = arith.mulf %830, %133 : vector<8x128xf32>
    %832 = arith.addf %828, %831 : vector<8x128xf32>
    %c198 = arith.constant 198 : index
    %833 = memref.load %arg1[%c198] : memref<234xf32, #tpu.memory_space<smem>>
    %834 = vector.broadcast %833 : f32 to vector<8x128xf32>
    %835 = arith.mulf %834, %153 : vector<8x128xf32>
    %836 = arith.addf %832, %835 : vector<8x128xf32>
    %c199 = arith.constant 199 : index
    %837 = memref.load %arg1[%c199] : memref<234xf32, #tpu.memory_space<smem>>
    %838 = vector.broadcast %837 : f32 to vector<8x128xf32>
    %839 = arith.mulf %838, %173 : vector<8x128xf32>
    %840 = arith.addf %836, %839 : vector<8x128xf32>
    %c200 = arith.constant 200 : index
    %841 = memref.load %arg1[%c200] : memref<234xf32, #tpu.memory_space<smem>>
    %842 = vector.broadcast %841 : f32 to vector<8x128xf32>
    %843 = arith.mulf %842, %193 : vector<8x128xf32>
    %844 = arith.addf %840, %843 : vector<8x128xf32>
    %c201 = arith.constant 201 : index
    %845 = memref.load %arg1[%c201] : memref<234xf32, #tpu.memory_space<smem>>
    %846 = vector.broadcast %845 : f32 to vector<8x128xf32>
    %847 = arith.mulf %846, %213 : vector<8x128xf32>
    %848 = arith.addf %844, %847 : vector<8x128xf32>
    %c202 = arith.constant 202 : index
    %849 = memref.load %arg1[%c202] : memref<234xf32, #tpu.memory_space<smem>>
    %850 = vector.broadcast %849 : f32 to vector<8x128xf32>
    %851 = arith.mulf %850, %233 : vector<8x128xf32>
    %852 = arith.addf %848, %851 : vector<8x128xf32>
    %c203 = arith.constant 203 : index
    %853 = memref.load %arg1[%c203] : memref<234xf32, #tpu.memory_space<smem>>
    %854 = vector.broadcast %853 : f32 to vector<8x128xf32>
    %855 = arith.mulf %854, %253 : vector<8x128xf32>
    %856 = arith.addf %852, %855 : vector<8x128xf32>
    %c204 = arith.constant 204 : index
    %857 = memref.load %arg1[%c204] : memref<234xf32, #tpu.memory_space<smem>>
    %858 = vector.broadcast %857 : f32 to vector<8x128xf32>
    %859 = arith.mulf %858, %273 : vector<8x128xf32>
    %860 = arith.addf %856, %859 : vector<8x128xf32>
    %c205 = arith.constant 205 : index
    %861 = memref.load %arg1[%c205] : memref<234xf32, #tpu.memory_space<smem>>
    %862 = vector.broadcast %861 : f32 to vector<8x128xf32>
    %863 = arith.mulf %862, %293 : vector<8x128xf32>
    %864 = arith.addf %860, %863 : vector<8x128xf32>
    %c206 = arith.constant 206 : index
    %865 = memref.load %arg1[%c206] : memref<234xf32, #tpu.memory_space<smem>>
    %866 = vector.broadcast %865 : f32 to vector<8x128xf32>
    %867 = arith.mulf %866, %313 : vector<8x128xf32>
    %868 = arith.addf %864, %867 : vector<8x128xf32>
    %c207 = arith.constant 207 : index
    %869 = memref.load %arg1[%c207] : memref<234xf32, #tpu.memory_space<smem>>
    %870 = vector.broadcast %869 : f32 to vector<8x128xf32>
    %871 = arith.mulf %870, %333 : vector<8x128xf32>
    %872 = arith.addf %868, %871 : vector<8x128xf32>
    %c215 = arith.constant 215 : index
    %873 = memref.load %arg1[%c215] : memref<234xf32, #tpu.memory_space<smem>>
    %874 = vector.broadcast %873 : f32 to vector<8x128xf32>
    %875 = arith.addf %872, %874 : vector<8x128xf32>
    %cst_30 = arith.constant 0.000000e+00 : f32
    %876 = vector.broadcast %cst_30 : f32 to vector<8x128xf32>
    %877 = arith.maximumf %875, %876 : vector<8x128xf32>
    %c216 = arith.constant 216 : index
    %878 = memref.load %arg1[%c216] : memref<234xf32, #tpu.memory_space<smem>>
    %879 = vector.broadcast %878 : f32 to vector<8x128xf32>
    %880 = arith.mulf %879, %401 : vector<8x128xf32>
    %c217 = arith.constant 217 : index
    %881 = memref.load %arg1[%c217] : memref<234xf32, #tpu.memory_space<smem>>
    %882 = vector.broadcast %881 : f32 to vector<8x128xf32>
    %883 = arith.mulf %882, %469 : vector<8x128xf32>
    %884 = arith.addf %880, %883 : vector<8x128xf32>
    %c218 = arith.constant 218 : index
    %885 = memref.load %arg1[%c218] : memref<234xf32, #tpu.memory_space<smem>>
    %886 = vector.broadcast %885 : f32 to vector<8x128xf32>
    %887 = arith.mulf %886, %537 : vector<8x128xf32>
    %888 = arith.addf %884, %887 : vector<8x128xf32>
    %c219 = arith.constant 219 : index
    %889 = memref.load %arg1[%c219] : memref<234xf32, #tpu.memory_space<smem>>
    %890 = vector.broadcast %889 : f32 to vector<8x128xf32>
    %891 = arith.mulf %890, %605 : vector<8x128xf32>
    %892 = arith.addf %888, %891 : vector<8x128xf32>
    %c220 = arith.constant 220 : index
    %893 = memref.load %arg1[%c220] : memref<234xf32, #tpu.memory_space<smem>>
    %894 = vector.broadcast %893 : f32 to vector<8x128xf32>
    %895 = arith.mulf %894, %673 : vector<8x128xf32>
    %896 = arith.addf %892, %895 : vector<8x128xf32>
    %c221 = arith.constant 221 : index
    %897 = memref.load %arg1[%c221] : memref<234xf32, #tpu.memory_space<smem>>
    %898 = vector.broadcast %897 : f32 to vector<8x128xf32>
    %899 = arith.mulf %898, %741 : vector<8x128xf32>
    %900 = arith.addf %896, %899 : vector<8x128xf32>
    %c222 = arith.constant 222 : index
    %901 = memref.load %arg1[%c222] : memref<234xf32, #tpu.memory_space<smem>>
    %902 = vector.broadcast %901 : f32 to vector<8x128xf32>
    %903 = arith.mulf %902, %809 : vector<8x128xf32>
    %904 = arith.addf %900, %903 : vector<8x128xf32>
    %c223 = arith.constant 223 : index
    %905 = memref.load %arg1[%c223] : memref<234xf32, #tpu.memory_space<smem>>
    %906 = vector.broadcast %905 : f32 to vector<8x128xf32>
    %907 = arith.mulf %906, %877 : vector<8x128xf32>
    %908 = arith.addf %904, %907 : vector<8x128xf32>
    %c232 = arith.constant 232 : index
    %909 = memref.load %arg1[%c232] : memref<234xf32, #tpu.memory_space<smem>>
    %910 = vector.broadcast %909 : f32 to vector<8x128xf32>
    %911 = arith.addf %908, %910 : vector<8x128xf32>
    %c224 = arith.constant 224 : index
    %912 = memref.load %arg1[%c224] : memref<234xf32, #tpu.memory_space<smem>>
    %913 = vector.broadcast %912 : f32 to vector<8x128xf32>
    %914 = arith.mulf %913, %401 : vector<8x128xf32>
    %c225 = arith.constant 225 : index
    %915 = memref.load %arg1[%c225] : memref<234xf32, #tpu.memory_space<smem>>
    %916 = vector.broadcast %915 : f32 to vector<8x128xf32>
    %917 = arith.mulf %916, %469 : vector<8x128xf32>
    %918 = arith.addf %914, %917 : vector<8x128xf32>
    %c226 = arith.constant 226 : index
    %919 = memref.load %arg1[%c226] : memref<234xf32, #tpu.memory_space<smem>>
    %920 = vector.broadcast %919 : f32 to vector<8x128xf32>
    %921 = arith.mulf %920, %537 : vector<8x128xf32>
    %922 = arith.addf %918, %921 : vector<8x128xf32>
    %c227 = arith.constant 227 : index
    %923 = memref.load %arg1[%c227] : memref<234xf32, #tpu.memory_space<smem>>
    %924 = vector.broadcast %923 : f32 to vector<8x128xf32>
    %925 = arith.mulf %924, %605 : vector<8x128xf32>
    %926 = arith.addf %922, %925 : vector<8x128xf32>
    %c228 = arith.constant 228 : index
    %927 = memref.load %arg1[%c228] : memref<234xf32, #tpu.memory_space<smem>>
    %928 = vector.broadcast %927 : f32 to vector<8x128xf32>
    %929 = arith.mulf %928, %673 : vector<8x128xf32>
    %930 = arith.addf %926, %929 : vector<8x128xf32>
    %c229 = arith.constant 229 : index
    %931 = memref.load %arg1[%c229] : memref<234xf32, #tpu.memory_space<smem>>
    %932 = vector.broadcast %931 : f32 to vector<8x128xf32>
    %933 = arith.mulf %932, %741 : vector<8x128xf32>
    %934 = arith.addf %930, %933 : vector<8x128xf32>
    %c230 = arith.constant 230 : index
    %935 = memref.load %arg1[%c230] : memref<234xf32, #tpu.memory_space<smem>>
    %936 = vector.broadcast %935 : f32 to vector<8x128xf32>
    %937 = arith.mulf %936, %809 : vector<8x128xf32>
    %938 = arith.addf %934, %937 : vector<8x128xf32>
    %c231 = arith.constant 231 : index
    %939 = memref.load %arg1[%c231] : memref<234xf32, #tpu.memory_space<smem>>
    %940 = vector.broadcast %939 : f32 to vector<8x128xf32>
    %941 = arith.mulf %940, %877 : vector<8x128xf32>
    %942 = arith.addf %938, %941 : vector<8x128xf32>
    %c233 = arith.constant 233 : index
    %943 = memref.load %arg1[%c233] : memref<234xf32, #tpu.memory_space<smem>>
    %944 = vector.broadcast %943 : f32 to vector<8x128xf32>
    %945 = arith.addf %942, %944 : vector<8x128xf32>
    %c0_31 = arith.constant 0 : index
    %946 = arith.index_cast %1 : i32 to index
    %c0_32 = arith.constant 0 : index
    %947 = vector.load %arg3[%c0_31, %946, %c0_32] : memref<2x8x128xf32, #tpu.memory_space<vmem>>, vector<1x8x128xf32>
    %948 = vector.shape_cast %947 : vector<1x8x128xf32> to vector<8x128xf32>
    %949 = vector.shape_cast %911 : vector<8x128xf32> to vector<1x8x128xf32>
    tpu.vector_store %arg3[%c0_31, %946, %c0_32], %949 {strides = array<i32>} : memref<2x8x128xf32, #tpu.memory_space<vmem>>, vector<1x8x128xf32>,
    %c1_33 = arith.constant 1 : index
    %950 = arith.index_cast %1 : i32 to index
    %c0_34 = arith.constant 0 : index
    %951 = vector.load %arg3[%c1_33, %950, %c0_34] : memref<2x8x128xf32, #tpu.memory_space<vmem>>, vector<1x8x128xf32>
    %952 = vector.shape_cast %951 : vector<1x8x128xf32> to vector<8x128xf32>
    %953 = vector.shape_cast %945 : vector<8x128xf32> to vector<1x8x128xf32>
    tpu.vector_store %arg3[%c1_33, %950, %c0_34], %953 {strides = array<i32>} : memref<2x8x128xf32, #tpu.memory_space<vmem>>, vector<1x8x128xf32>,
    %c1_i32 = arith.constant 1 : i32
    return
  }
  func.func @transform_0(%arg0: i32) -> i32 {
    %c0_i32 = arith.constant 0 : i32
    %c0_i32_0 = arith.constant 0 : i32
    return %c0_i32 : i32
  }
  func.func @transform_1(%arg0: i32) -> (i32, i32, i32) {
    %c0_i32 = arith.constant 0 : i32
    %c0_i32_0 = arith.constant 0 : i32
    %c0_i32_1 = arith.constant 0 : i32
    return %c0_i32, %arg0, %c0_i32_0 : i32, i32, i32
  }
  func.func @transform_2(%arg0: i32) -> (i32, i32, i32) {
    %c0_i32 = arith.constant 0 : i32
    %c0_i32_0 = arith.constant 0 : i32
    %c0_i32_1 = arith.constant 0 : i32
    return %c0_i32, %arg0, %c0_i32_0 : i32, i32, i32
  }
}

</mosaic_0001>

<bundles_post_ra>
// kernel: tpu_custom_call.1
= control target key start
LH: loop header
LB: loop body
LE: loop exit
PB: predicated region body
PF: predicated region fallthrough
CT: control target
= control target key end

     0   :  { %s2291_s0 = inlined_call_operand.hbm [shape: f32[234], index: 0, kind: input, shape index: {}]   ;;  %s2292_s1 = inlined_call_operand.hbm [shape: f32[4,8,128], index: 1, kind: input, shape index: {}]   ;;  %s2293_s2 = inlined_call_operand.hbm [shape: f32[2,8,128], index: 2, kind: output, shape index: {}]  }
   0x1   :  { %2300 = sst [smem:[#allocation55_spill]] %s2293_s2 }
   0x2   :  { %7 = vsyncpa [#allocation5], 0 }
   0x3   :  { %8 = vsyncpa [#allocation3], 0 }
   0x4   :  { %9 = vsyncpa [#allocation4], 0  ;;  %s1272_s9 = smov [#allocation2]   ;;  %s1273_s12 = smov [#allocation6]  }
   0x5   :  { %17 = dma.hbm_to_smem %s2291_s0, 32, %s1272_s9, [#allocation5]  }
   0x6   :  { %s23_s13 = sshll.u32 %s1273_s12, 4  ;;  %s24_s13 = int_to_ptr.vmem [resolvable:$true] %s23_s13 }
   0x7   :  { %s1234_s14 = scalar_lea.vmem %s24_s13, 512  ;;  %p1239_p1 = scmp.lt.s32.totalorder %s24_s13, %s24_s13 }
   0x8   :  { %p1235_p0 = scmp.ne.s32.totalorder %s24_s13, %s1234_s14  ;;  %p1240_p2 = scmp.lt.s32.totalorder %s1234_s14, %s1234_s14 }
   0xa   :  { %p1241_p3 = por %p1240_p2, %p1239_p1 }
   0xc   :  { %p1242_p4 = pnand %p1241_p3, %p1235_p0 }
   0xe   :  { %1245 = shalt.err (!%p1242_p4)
}
   0xf   :  { %s2294_s15 = smov 128   ;;  %s2295_s16 = smov 8  }
  0x10   :  { %29 = dma.hbm_to_vmem [thread:$0]  %s2292_s1, 512, %s24_s13, [#allocation3], %s2294_s15, %s2294_s15, %s2295_s16  }
  0x11   :  { %1266 = dma.done.wait [#allocation5], 32  }
  0x12   :  { %1267 = vsyncadd [#allocation5], 4294967264 }
  0x13   :  { %1268 = dma.done.wait [#allocation3], 512  }
  0x14   :  { %1269 = vsyncadd [#allocation3], 4294966784 }
  0x15   :  { %36 = sfence }
  0x16   :  { %s1301_s0 = sld [smem:[#allocation2]]  ;;  %v1431_v0 = vld [vmem:[#allocation6] sm:$0xff]  ;;  %v1436_v2 = vld [vmem:[#allocation6 + $0x8] sm:$0xff]  ;;  %v1452_v11 = vld [vmem:[#allocation6 + $0x10] sm:$0xff] }
  0x17   :  { %s1303_s19 = sld [smem:[#allocation2 + $0x1]]  ;;  %v1483_v32 = vld [vmem:[#allocation6 + $0x18] sm:$0xff] }
  0x18   :  { %s1305_s20 = sld [smem:[#allocation2 + $0x2]] }
  0x19   :  { %s1307_s21 = sld [smem:[#allocation2 + $0x3]] }
  0x1a   :  { %s1309_s22 = sld [smem:[#allocation2 + $0x40]] }
  0x1b   :  { %s1311_s23 = sld [smem:[#allocation2 + $0x4]] }
  0x1c   :  { %s1313_s24 = sld [smem:[#allocation2 + $0x5]]  ;;  %v48_v1 = vstv %s1301_s0 }
  0x1d   :  { %s1315_s1 = sld [smem:[#allocation2 + $0x6]]  ;;  %v51_v3 = vstv %s1303_s19  ;;  %v49_v7 = vmul.f32 %v48_v1, %v1431_v0 }
  0x1e   :  { %s1317_s25 = sld [smem:[#allocation2 + $0x7]]  ;;  %v52_v12 = vmul.f32 %v51_v3, %v1436_v2  ;;  %v55_v13 = vstv %s1305_s20 }
  0x1f   :  { %s1319_s26 = sld [smem:[#allocation2 + $0x41]]  ;;  %v56_v24 = vmul.f32 %v55_v13, %v1452_v11  ;;  %v59_v29 = vstv %s1307_s21 }
  0x20   :  { %2301 = sst [smem:[#allocation11_spill]] %s1309_s22  ;;  %v53_v28 = vadd.f32 %v52_v12, %v49_v7  ;;  %v60_v45 = vmul.f32 %v59_v29, %v1483_v32 }
  0x21   :  { %s1321_s27 = sld [smem:[#allocation2 + $0x8]]  ;;  %v67_v4 = vstv %s1311_s23 }
  0x22   :  { %s1323_s28 = sld [smem:[#allocation2 + $0x9]]  ;;  %v70_v5 = vstv %s1313_s24  ;;  %v68_v16 = vmul.f32 %v67_v4, %v1431_v0  ;;  %v57_v47 = vadd.f32 %v56_v24, %v53_v28 }
  0x23   :  { %s1325_s29 = sld [smem:[#allocation2 + $0xa]]  ;;  %v71_v17 = vmul.f32 %v70_v5, %v1436_v2  ;;  %v74_v18 = vstv %s1315_s1 }
  0x24   :  { %s1327_s30 = sld [smem:[#allocation2 + $0xb]]  ;;  %v75_v30 = vmul.f32 %v74_v18, %v1452_v11  ;;  %v78_v34 = vstv %s1317_s25  ;;  %v61_v59 = vadd.f32 %v60_v45, %v57_v47 }
  0x25   :  { %2302 = sst [smem:[#allocation12_spill]] %s1319_s26  ;;  %v72_v33 = vadd.f32 %v71_v17, %v68_v16  ;;  %v79_v49 = vmul.f32 %v78_v34, %v1483_v32 }
  0x26   :  { %s1329_s3 = sld [smem:[#allocation2 + $0x42]] }
  0x27   :  { %s1331_s4 = sld [smem:[#allocation2 + $0xc]]  ;;  %v86_v6 = vstv %s1321_s27  ;;  %v76_v48 = vadd.f32 %v75_v30, %v72_v33 }
  0x28   :  { %s1333_s5 = sld [smem:[#allocation2 + $0xd]]  ;;  %v89_v8 = vstv %s1323_s28  ;;  %v87_v19 = vmul.f32 %v86_v6, %v1431_v0 }
  0x29   :  { %s1335_s6 = sld [smem:[#allocation2 + $0xe]]  ;;  %v90_v20 = vmul.f32 %v89_v8, %v1436_v2  ;;  %v93_v21 = vstv %s1325_s29  ;;  %v80_v61 = vadd.f32 %v79_v49, %v76_v48 }
  0x2a   :  { %s1337_s7 = sld [smem:[#allocation2 + $0xf]]  ;;  %v94_v35 = vmul.f32 %v93_v21, %v1452_v11  ;;  %v97_v36 = vstv %s1327_s30 }
  0x2b   :  { %s1339_s8 = sld [smem:[#allocation2 + $0x43]]  ;;  %v91_v37 = vadd.f32 %v90_v20, %v87_v19  ;;  %v98_v50 = vmul.f32 %v97_v36, %v1483_v32 }
  0x2c   :  { %2303 = sst [smem:[#allocation13_spill]] %s1329_s3 }
  0x2d   :  { %s1341_s9 = sld [smem:[#allocation2 + $0x10]]  ;;  %v105_v9 = vstv %s1331_s4  ;;  %v95_v51 = vadd.f32 %v94_v35, %v91_v37 }
  0x2e   :  { %s1343_s10 = sld [smem:[#allocation2 + $0x11]]  ;;  %v108_v10 = vstv %s1333_s5  ;;  %v106_v22 = vmul.f32 %v105_v9, %v1431_v0 }
  0x2f   :  { %s1345_s11 = sld [smem:[#allocation2 + $0x12]]  ;;  %v109_v23 = vmul.f32 %v108_v10, %v1436_v2  ;;  %v112_v25 = vstv %s1335_s6  ;;  %v99_v3 = vadd.f32 %v98_v50, %v95_v51 }
  0x30   :  { %s1347_s12 = sld [smem:[#allocation2 + $0x13]]  ;;  %v113_v39 = vmul.f32 %v112_v25, %v1452_v11  ;;  %v116_v40 = vstv %s1337_s7 }
  0x31   :  { %2304 = sst [smem:[#allocation14_spill]] %s1339_s8  ;;  %v110_v38 = vadd.f32 %v109_v23, %v106_v22  ;;  %v117_v52 = vmul.f32 %v116_v40, %v1483_v32 }
  0x32   :  { %s1349_s13 = sld [smem:[#allocation2 + $0x44]] }
  0x33   :  { %s1351_s14 = sld [smem:[#allocation2 + $0x14]]  ;;  %v124_v14 = vstv %s1341_s9  ;;  %v114_v55 = vadd.f32 %v113_v39, %v110_v38 }
  0x34   :  { %s1353_s17 = sld [smem:[#allocation2 + $0x15]]  ;;  %v127_v15 = vstv %s1343_s10  ;;  %v125_v26 = vmul.f32 %v124_v14, %v1431_v0 }
  0x35   :  { %s1355_s18 = sld [smem:[#allocation2 + $0x16]]  ;;  %v128_v27 = vmul.f32 %v127_v15, %v1436_v2  ;;  %v131_v31 = vstv %s1345_s11  ;;  %v118_v4 = vadd.f32 %v117_v52, %v114_v55 }
  0x36   :  { %2305 = sst [smem:[#allocation15_spill]] %s1347_s12  ;;  %v132_v42 = vmul.f32 %v131_v31, %v1452_v11 }
  0x37   :  { %s1357_s15 = sld [smem:[#allocation2 + $0x17]]  ;;  %v129_v41 = vadd.f32 %v128_v27, %v125_v26 }
  0x38   :  { %2306 = sst [smem:[#allocation16_spill]] %s1349_s13 }
  0x39   :  { %s1359_s16 = sld [smem:[#allocation2 + $0x45]]  ;;  %v143_v43 = vstv %s1351_s14  ;;  %v133_v56 = vadd.f32 %v132_v42, %v129_v41 }
  0x3a   :  { %2307 = sst [smem:[#allocation17_spill]] %s1353_s17  ;;  %v144_v53 = vmul.f32 %v143_v43, %v1431_v0 }
  0x3b   :  { %2308 = sst [smem:[#allocation18_spill]] %s1355_s18 }
  0x3c   :  { %s1361_s2 = sld [smem:[#allocation2 + $0x18]] }
  0x3d   :  { %2309 = sst [smem:[#allocation19_spill]] %s1357_s15 }
  0x3e   :  { %s1363_s8 = sld [smem:[#allocation2 + $0x19]] }
  0x3f   :  { %2310 = sst [smem:[#allocation20_spill]] %s1359_s16 }
  0x40   :  { %s1365_s3 = sld [smem:[#allocation2 + $0x1a]] }
  0x41   :  { %s1367_s26 = sld [smem:[#allocation2 + $0x1b]] }
  0x42   :  { %2311 = sst [smem:[#allocation21_spill]] %s1361_s2 }
  0x43   :  { %s1369_s22 = sld [smem:[#allocation2 + $0x46]] }
  0x44   :  { %2312 = sst [smem:[#allocation22_spill]] %s1363_s8 }
  0x45   :  { %s1371_s13 = sld [smem:[#allocation2 + $0x1c]] }
  0x46   :  { %2313 = sst [smem:[#allocation23_spill]] %s1365_s3 }
  0x47   :  { %2314 = sst [smem:[#allocation24_spill]] %s1367_s26 }
  0x48   :  { %s1373_s12 = sld [smem:[#allocation2 + $0x1d]] }
  0x49   :  { %2315 = sst [smem:[#allocation25_spill]] %s1369_s22 }
  0x4a   :  { %s1375_s17 = sld [smem:[#allocation2 + $0x1e]] }
  0x4b   :  { %2316 = sst [smem:[#allocation26_spill]] %s1371_s13 }
  0x4c   :  { %s1377_s18 = sld [smem:[#allocation2 + $0x1f]] }
  0x4d   :  { %s1379_s15 = sld [smem:[#allocation2 + $0x47]] }
  0x4e   :  { %2317 = sst [smem:[#allocation27_spill]] %s1373_s12 }
  0x4f   :  { %s1381_s16 = sld [smem:[#allocation2 + $0x20]] }
  0x50   :  { %2318 = sst [smem:[#allocation28_spill]] %s1375_s17 }
  0x51   :  { %s1383_s2 = sld [smem:[#allocation2 + $0x21]] }
  0x52   :  { %2319 = sst [smem:[#allocation29_spill]] %s1377_s18 }
  0x53   :  { %2320 = sst [smem:[#allocation30_spill]] %s1379_s15 }
  0x54   :  { %s1385_s8 = sld [smem:[#allocation2 + $0x22]] }
  0x55   :  { %s1387_s3 = sld [smem:[#allocation2 + $0x23]]  ;;  %v200_v38 = vstv %s1381_s16 }
  0x56   :  { %s1389_s26 = sld [smem:[#allocation2 + $0x48]]  ;;  %v201_v49 = vmul.f32 %v200_v38, %v1431_v0 }
  0x57   :  { %2321 = sst [smem:[#allocation31_spill]] %s1383_s2 }
  0x58   :  { %s1391_s22 = sld [smem:[#allocation2 + $0x24]] }
  0x59   :  { %s1393_s13 = sld [smem:[#allocation2 + $0x25]] }
  0x5a   :  { %2322 = sst [smem:[#allocation32_spill]] %s1385_s8 }
  0x5b   :  { %2323 = sst [smem:[#allocation33_spill]] %s1387_s3 }
  0x5c   :  { %2324 = sst [smem:[#allocation34_spill]] %s1389_s26 }
  0x5d   :  { %s1395_s12 = sld [smem:[#allocation2 + $0x26]] }
  0x5e   :  { %2325 = sst [smem:[#allocation35_spill]] %s1391_s22 }
  0x5f   :  { %s1397_s17 = sld [smem:[#allocation2 + $0x27]]  ;;  %v222_v43 = vstv %s1393_s13 }
  0x60   :  { %s1399_s18 = sld [smem:[#allocation2 + $0x49]] }
  0x61   :  { %s1401_s15 = sld [smem:[#allocation2 + $0x28]] }
  0x62   :  { %s1403_s2 = sld [smem:[#allocation2 + $0x29]] }
  0x63   :  { %2326 = sst [smem:[#allocation36_spill]] %s1395_s12 }
  0x64   :  { %s1405_s8 = sld [smem:[#allocation2 + $0x2a]] }
  0x65   :  { %2327 = sst [smem:[#allocation37_spill]] %s1397_s17 }
  0x66   :  { %2328 = sst [smem:[#allocation38_spill]] %s1399_s18 }
  0x67   :  { %2329 = sst [smem:[#allocation39_spill]] %s1401_s15 }
  0x68   :  { %2330 = sst [smem:[#allocation40_spill]] %s1403_s2 }
  0x69   :  { %s1407_s3 = sld [smem:[#allocation2 + $0x2b]] }
  0x6a   :  { %2331 = sst [smem:[#allocation41_spill]] %s1405_s8 }
  0x6b   :  { %s1409_s26 = sld [smem:[#allocation2 + $0x4a]] }
  0x6c   :  { %s1411_s22 = sld [smem:[#allocation2 + $0x2c]] }
  0x6d   :  { %s1413_s12 = sld [smem:[#allocation2 + $0x2d]] }
  0x6e   :  { %s1415_s17 = sld [smem:[#allocation2 + $0x2e]] }
  0x6f   :  { %2332 = sst [smem:[#allocation42_spill]] %s1407_s3 }
  0x70   :  { %s1417_s18 = sld [smem:[#allocation2 + $0x2f]] }
  0x71   :  { %2333 = sst [smem:[#allocation43_spill]] %s1409_s26 }
  0x72   :  { %s1419_s15 = sld [smem:[#allocation2 + $0x4b]] }
  0x73   :  { %2334 = sst [smem:[#allocation44_spill]] %s1413_s12 }
  0x74   :  { %s1421_s2 = sld [smem:[#allocation2 + $0x30]] }
  0x75   :  { %s1423_s3 = sld [smem:[#allocation2 + $0x31]] }
  0x76   :  { %2335 = sst [smem:[#allocation45_spill]] %s1417_s18 }
  0x77   :  { %s1425_s26 = sld [smem:[#allocation2 + $0x32]] }
  0x78   :  { %2336 = sst [smem:[#allocation46_spill]] %s1419_s15 }
  0x79   :  { %s1427_s8 = sld [smem:[#allocation2 + $0x33]] }
  0x7a   :  { %s1429_s12 = sld [smem:[#allocation2 + $0x4c]] }
  0x7b   :  { %s1434_s18 = sld [smem:[#allocation2 + $0x34]] }
  0x7c   :  { %s1439_s15 = sld [smem:[#allocation2 + $0x35]] }
  0x7d   :  { %s1450_s0 = sld [smem:[#allocation2 + $0x37]] }
  0x7e   :  { %s1458_s19 = sld [smem:[#allocation2 + $0x4d]] }
  0x7f   :  { %2337 = sst [smem:[#allocation47_spill]] %s1427_s8 }
  0x80   :  { %s1444_s8 = sld [smem:[#allocation2 + $0x36]] }
  0x81   :  { %s1464_s23 = sld [smem:[#allocation2 + $0x38]] }
  0x82   :  { %s1470_s20 = sld [smem:[#allocation2 + $0x39]] }
  0x83   :  { %2338 = sst [smem:[#allocation48_spill]] %s1450_s0 }
  0x84   :  { %2339 = sst [smem:[#allocation49_spill]] %s1458_s19 }
  0x85   :  { %s1476_s24 = sld [smem:[#allocation2 + $0x3a]] }
  0x86   :  { %s2343_s1 = sld [smem:[#allocation17_spill]] }
  0x87   :  { %2340 = sst [smem:[#allocation50_spill]] %s1464_s23 }
  0x88   :  { %2341 = sst [smem:[#allocation51_spill]] %s1470_s20 }
  0x89   :  { %s1481_s27 = sld [smem:[#allocation2 + $0x3b]] }
  0x8a   :  { %s2345_s28 = sld [smem:[#allocation15_spill]] }
  0x8b   :  { %2342 = sst [smem:[#allocation52_spill]] %s1476_s24 }
  0x8c   :  { %s1488_s29 = sld [smem:[#allocation2 + $0x4e]]  ;;  %v146_v44 = vstv %s2343_s1 }
  0x8d   :  { %s1492_s21 = sld [smem:[#allocation2 + $0x3c]]  ;;  %v147_v54 = vmul.f32 %v146_v44, %v1436_v2 }
  0x8e   :  { %s1497_s4 = sld [smem:[#allocation2 + $0x3d]] }
  0x8f   :  { %2344 = sst [smem:[#allocation17_spill]] %s1481_s27  ;;  %v148_v63 = vadd.f32 %v147_v54, %v144_v53  ;;  %v223_v54 = vmul.f32 %v222_v43, %v1436_v2 }
  0x90   :  { %s2349_s25 = sld [smem:[#allocation18_spill]]  ;;  %v135_v46 = vstv %s2345_s28 }
  0x91   :  { %s1501_s30 = sld [smem:[#allocation2 + $0x3e]]  ;;  %v136_v57 = vmul.f32 %v135_v46, %v1483_v32 }
  0x92   :  { %2346 = sst [smem:[#allocation15_spill]] %s1488_s29 }
  0x93   :  { %2347 = sst [smem:[#allocation53_spill]] %s1492_s21  ;;  %v137_v5 = vadd.f32 %v136_v57, %v133_v56 }
  0x94   :  { %2348 = sst [smem:[#allocation54_spill]] %s1497_s4 }
  0x95   :  { %s2351_s5 = sld [smem:[#allocation11_spill]] }
  0x96   :  { %s1505_s6 = sld [smem:[#allocation2 + $0x3f]]  ;;  %v150_v58 = vstv %s2349_s25 }
  0x97   :  { %2350 = sst [smem:[#allocation18_spill]] %s1501_s30  ;;  %v151_v1 = vmul.f32 %v150_v58, %v1452_v11  ;;  %v257_v58 = vstv %s1411_s22 }
  0x98   :  { %s2353_s7 = sld [smem:[#allocation12_spill]] }
  0x99   :  { %s1510_s9 = sld [smem:[#allocation2 + $0x4f]]  ;;  %v152_v15 = vadd.f32 %v151_v1, %v148_v63 }
  0x9a   :  { %s2355_s10 = sld [smem:[#allocation19_spill]] }
  0x9b   :  { %s2356_s11 = sld [smem:[#allocation13_spill]]  ;;  %v63_v60 = vstv %s2351_s5 }
  0x9c   :  { %2352 = sst [smem:[#allocation11_spill]] %s1505_s6  ;;  %v64_v13 = vadd.f32 %v63_v60, %v61_v59 }
  0x9d   :  { %s1514_s14 = sld [smem:[#allocation2 + $0x50]] }
  0x9e   :  { %s2357_s1 = sld [smem:[#allocation14_spill]]  ;;  %v82_v62 = vstv %s2353_s7  ;;  %v1549_v23 = vmax.f32 %v64_v13, 0.0 }
  0x9f   :  { %2354 = sst [smem:[#allocation12_spill]] %s1510_s9  ;;  %v83_v14 = vadd.f32 %v82_v62, %v80_v61 }
  0xa0   :  { %s1516_s28 = sld [smem:[#allocation2 + $0x51]]  ;;  %v154_v6 = vstv %s2355_s10 }
  0xa1   :  { %s2358_s29 = sld [smem:[#allocation16_spill]]  ;;  %v101_v7 = vstv %s2356_s11  ;;  %v155_v16 = vmul.f32 %v154_v6, %v1483_v32  ;;  %v1551_v24 = vmax.f32 %v83_v14, 0.0  ;;  %v264_v14 = vstv %s1415_s17 }
  0xa2   :  { %s2359_s19 = sld [smem:[#allocation21_spill]]  ;;  %v102_v17 = vadd.f32 %v101_v7, %v99_v3 }
  0xa3   :  { %s1519_s6 = sld [smem:[#allocation2 + $0x52]]  ;;  %v156_v25 = vadd.f32 %v155_v16, %v152_v15 }
  0xa4   :  { %s2360_s30 = sld [smem:[#allocation22_spill]]  ;;  %v120_v8 = vstv %s2357_s1  ;;  %v1556_v27 = vmax.f32 %v102_v17, 0.0 }
  0xa5   :  { %s1523_s9 = sld [smem:[#allocation2 + $0x53]]  ;;  %v121_v18 = vadd.f32 %v120_v8, %v118_v4  ;;  %v352_v4 = vstv %s1514_s14  ;;  %v258_v8 = vmul.f32 %v257_v58, %v1431_v0 }
  0xa6   :  { %s1526_s25 = sld [smem:[#allocation2 + $0x54]]  ;;  %v353_v17 = vmul.f32 %v352_v4, %v1549_v23 }
  0xa7   :  { %v139_v9 = vstv %s2358_s29  ;;  %s1531_s5 = sld [smem:[#allocation2 + $0x55]]  ;;  %v1558_v28 = vmax.f32 %v121_v18, 0.0 }
  0xa8   :  { %s2361_s27 = sld [smem:[#allocation23_spill]]  ;;  %v162_v10 = vstv %s2359_s19  ;;  %v140_v19 = vadd.f32 %v139_v9, %v137_v5  ;;  %v355_v5 = vstv %s1516_s28 }
  0xa9   :  { %s1535_s7 = sld [smem:[#allocation2 + $0x56]]  ;;  %v163_v20 = vmul.f32 %v162_v10, %v1431_v0  ;;  %v356_v18 = vmul.f32 %v355_v5, %v1551_v24 }
  0xaa   :  { %v165_v12 = vstv %s2360_s30  ;;  %s2362_s4 = sld [smem:[#allocation24_spill]]  ;;  %v1560_v29 = vmax.f32 %v140_v19, 0.0 }
  0xab   :  { %s1538_s21 = sld [smem:[#allocation2 + $0x57]]  ;;  %v166_v21 = vmul.f32 %v165_v12, %v1436_v2 }
  0xac   :  { %s2364_s10 = sld [smem:[#allocation20_spill]] }
  0xad   :  { %s1540_s29 = sld [smem:[#allocation2 + $0x58]]  ;;  %v167_v31 = vadd.f32 %v166_v21, %v163_v20 }
  0xae   :  { %s2366_s19 = sld [smem:[#allocation26_spill]]  ;;  %v169_v22 = vstv %s2361_s27 }
  0xaf   :  { %s1544_s30 = sld [smem:[#allocation2 + $0x59]]  ;;  %v170_v33 = vmul.f32 %v169_v22, %v1452_v11  ;;  %v359_v22 = vstv %s1519_s6 }
  0xb0   :  { %s2368_s11 = sld [smem:[#allocation27_spill]]  ;;  %v173_v26 = vstv %s2362_s4  ;;  %v360_v43 = vmul.f32 %v359_v22, %v1556_v27 }
  0xb1   :  { %2363 = sst [smem:[#allocation19_spill]] %s1538_s21  ;;  %v1571_v36 = vmul.f32 %v173_v26, %v1483_v32  ;;  %v171_v48 = vadd.f32 %v170_v33, %v167_v31  ;;  %v265_v31 = vmul.f32 %v264_v14, %v1452_v11 }
  0xb2   :  { %s1547_s1 = sld [smem:[#allocation2 + $0x5a]]  ;;  %v158_v30 = vstv %s2364_s10 }
  0xb3   :  { %2365 = sst [smem:[#allocation13_spill]] %s1540_s29  ;;  %v1578_v40 = vadd.f32 %v158_v30, %v156_v25  ;;  %v175_v33 = vadd.f32 %v1571_v36, %v171_v48  ;;  %v363_v36 = vstv %s1523_s9 }
  0xb4   :  { %s2370_s21 = sld [smem:[#allocation25_spill]]  ;;  %v181_v34 = vstv %s2366_s19  ;;  %v364_v58 = vmul.f32 %v363_v36, %v1558_v28 }
  0xb5   :  { %2367 = sst [smem:[#allocation14_spill]] %s1544_s30  ;;  %v182_v44 = vmul.f32 %v181_v34, %v1431_v0 }
  0xb6   :  { %s2371_s0 = sld [smem:[#allocation31_spill]]  ;;  %v184_v35 = vstv %s2368_s11 }
  0xb7   :  { %s1554_s29 = sld [smem:[#allocation2 + $0x5b]]  ;;  %v185_v45 = vmul.f32 %v184_v35, %v1436_v2 }
  0xb8   :  { %2369 = sst [smem:[#allocation16_spill]] %s1547_s1 }
  0xb9   :  { %s2373_s24 = sld [smem:[#allocation28_spill]]  ;;  %v186_v60 = vadd.f32 %v185_v45, %v182_v44 }
  0xba   :  { %s2374_s30 = sld [smem:[#allocation35_spill]]  ;;  %v177_v37 = vstv %s2370_s21 }
  0xbb   :  { %s1563_s27 = sld [smem:[#allocation2 + $0x5c]] }
  0xbc   :  { %s2375_s1 = sld [smem:[#allocation39_spill]]  ;;  %v203_v39 = vstv %s2371_s0 }
  0xbd   :  { %2372 = sst [smem:[#allocation21_spill]] %s1554_s29  ;;  %v204_v50 = vmul.f32 %v203_v39, %v1436_v2  ;;  %v276_v39 = vstv %s1421_s2 }
  0xbe   :  { %s2376_s4 = sld [smem:[#allocation40_spill]] }
  0xbf   :  { %s1568_s29 = sld [smem:[#allocation2 + $0x5d]]  ;;  %v188_v41 = vstv %s2373_s24  ;;  %v205_v1 = vadd.f32 %v204_v50, %v201_v49 }
  0xc0   :  { %s2377_s20 = sld [smem:[#allocation32_spill]]  ;;  %v219_v42 = vstv %s2374_s30  ;;  %v189_v52 = vmul.f32 %v188_v41, %v1452_v11  ;;  %v279_v41 = vstv %s1423_s3 }
  0xc1   :  { %s1576_s23 = sld [smem:[#allocation2 + $0x5e]]  ;;  %v220_v53 = vmul.f32 %v219_v42, %v1431_v0  ;;  %v357_v42 = vadd.f32 %v356_v18, %v353_v17  ;;  %v295_v17 = vstv %s1434_s18 }
  0xc2   :  { %s2378_s10 = sld [smem:[#allocation36_spill]]  ;;  %v238_v46 = vstv %s2375_s1  ;;  %v190_v19 = vadd.f32 %v189_v52, %v186_v60 }
  0xc3   :  { %s1583_s19 = sld [smem:[#allocation2 + $0x5f]]  ;;  %v239_v56 = vmul.f32 %v238_v46, %v1431_v0  ;;  %v224_v6 = vadd.f32 %v223_v54, %v220_v53  ;;  %v277_v53 = vmul.f32 %v276_v39, %v1431_v0  ;;  %v280_v54 = vmul.f32 %v279_v41, %v1436_v2 }
  0xc4   :  { %s2380_s11 = sld [smem:[#allocation44_spill]]  ;;  %v241_v47 = vstv %s2376_s4  ;;  %v375_v39 = vstv %s1535_s7 }
  0xc5   :  { %s1589_s16 = sld [smem:[#allocation2 + $0xd0]]  ;;  %v242_v57 = vmul.f32 %v241_v47, %v1436_v2  ;;  %v281_v4 = vadd.f32 %v280_v54, %v277_v53 }
  0xc6   :  { %s2382_s0 = sld [smem:[#allocation29_spill]]  ;;  %v207_v51 = vstv %s2377_s20 }
  0xc7   :  { %s2383_s24 = sld [smem:[#allocation41_spill]]  ;;  %v208_v62 = vmul.f32 %v207_v51, %v1452_v11  ;;  %v243_v12 = vadd.f32 %v242_v57, %v239_v56  ;;  %v178_v51 = vadd.f32 %v177_v37, %v175_v33  ;;  %v283_v56 = vstv %s1425_s26 }
  0xc8   :  { %s1594_s13 = sld [smem:[#allocation2 + $0x60]]  ;;  %v226_v55 = vstv %s2378_s10  ;;  %v361_v57 = vadd.f32 %v360_v43, %v357_v42  ;;  %v284_v5 = vmul.f32 %v283_v56, %v1452_v11 }
  0xc9   :  { %2379 = sst [smem:[#allocation22_spill]] %s1583_s19  ;;  %v227_v7 = vmul.f32 %v226_v55, %v1452_v11  ;;  %v209_v20 = vadd.f32 %v208_v62, %v205_v1  ;;  %v1676_v62 = vmax.f32 %v1578_v40, 0.0 }
  0xca   :  { %s2384_s30 = sld [smem:[#allocation33_spill]]  ;;  %v260_v59 = vstv %s2380_s11 }
  0xcb   :  { %2381 = sst [smem:[#allocation23_spill]] %s1589_s16  ;;  %v261_v9 = vmul.f32 %v260_v59, %v1436_v2  ;;  %v228_v25 = vadd.f32 %v227_v7, %v224_v6 }
  0xcc   :  { %s1600_s1 = sld [smem:[#allocation2 + $0x61]]  ;;  %v192_v61 = vstv %s2382_s0 }
  0xcd   :  { %s1606_s20 = sld [smem:[#allocation2 + $0x62]]  ;;  %v245_v63 = vstv %s2383_s24  ;;  %v193_v15 = vmul.f32 %v192_v61, %v1483_v32  ;;  %v262_v30 = vadd.f32 %v261_v9, %v258_v8  ;;  %v367_v61 = vstv %s1526_s25 }
  0xce   :  { %s2385_s4 = sld [smem:[#allocation37_spill]]  ;;  %v246_v13 = vmul.f32 %v245_v63, %v1452_v11  ;;  %v419_v6 = vstv %s1594_s13  ;;  %v368_v40 = vmul.f32 %v367_v61, %v1560_v29 }
  0xcf   :  { %s1611_s16 = sld [smem:[#allocation2 + $0x63]]  ;;  %v194_v44 = vadd.f32 %v193_v15, %v190_v19  ;;  %v266_v49 = vadd.f32 %v265_v31, %v262_v30  ;;  %v371_v15 = vstv %s1531_s5  ;;  %v420_v18 = vmul.f32 %v419_v6, %v1549_v23 }
  0xd0   :  { %s2386_s10 = sld [smem:[#allocation42_spill]]  ;;  %v211_v3 = vstv %s2384_s30  ;;  %v247_v34 = vadd.f32 %v246_v13, %v243_v12  ;;  %v1690_v12 = vmax.f32 %v178_v51, 0.0  ;;  %v298_v30 = vstv %s1439_s15 }
  0xd1   :  { %s1616_s19 = sld [smem:[#allocation2 + $0x64]]  ;;  %v212_v21 = vmul.f32 %v211_v3, %v1483_v32  ;;  %v372_v33 = vmul.f32 %v371_v15, %v1676_v62  ;;  %v299_v36 = vmul.f32 %v298_v30, %v1436_v2 }
  0xd2   :  { %s1621_s22 = sld [smem:[#allocation2 + $0x65]]  ;;  %v422_v7 = vstv %s1600_s1  ;;  %v376_v51 = vmul.f32 %v375_v39, %v1690_v12 }
  0xd3   :  { %s1626_s11 = sld [smem:[#allocation2 + $0x66]]  ;;  %v213_v46 = vadd.f32 %v212_v21, %v209_v20  ;;  %v423_v19 = vmul.f32 %v422_v7, %v1551_v24  ;;  %v285_v21 = vadd.f32 %v284_v5, %v281_v4 }
  0xd4   :  { %v230_v10 = vstv %s2385_s4  ;;  %s2387_s14 = sld [smem:[#allocation45_spill]] }
  0xd5   :  { %s1632_s28 = sld [smem:[#allocation2 + $0x67]]  ;;  %v231_v26 = vmul.f32 %v230_v10, %v1483_v32  ;;  %v365_v10 = vadd.f32 %v364_v58, %v361_v57  ;;  %v424_v43 = vadd.f32 %v423_v19, %v420_v18 }
  0xd6   :  { %v249_v16 = vstv %s2386_s10  ;;  %s1636_s17 = sld [smem:[#allocation2 + $0x68]] }
  0xd7   :  { %s2388_s0 = sld [smem:[#allocation30_spill]]  ;;  %v250_v35 = vmul.f32 %v249_v16, %v1483_v32  ;;  %v232_v48 = vadd.f32 %v231_v26, %v228_v25  ;;  %v426_v25 = vstv %s1606_s20  ;;  %v369_v31 = vadd.f32 %v368_v40, %v365_v10 }
  0xd8   :  { %s1640_s24 = sld [smem:[#allocation2 + $0x69]]  ;;  %v438_v19 = vstv %s1621_s22 }
  0xd9   :  { %s2390_s30 = sld [smem:[#allocation34_spill]]  ;;  %v251_v55 = vadd.f32 %v250_v35, %v247_v34  ;;  %v291_v34 = vstv %s1429_s12  ;;  %v296_v35 = vmul.f32 %v295_v17, %v1431_v0 }
  0xda   :  { %v268_v38 = vstv %s2387_s14  ;;  %s1645_s6 = sld [smem:[#allocation2 + $0x6a]] }
  0xdb   :  { %s2391_s4 = sld [smem:[#allocation38_spill]]  ;;  %v269_v50 = vmul.f32 %v268_v38, %v1483_v32  ;;  %v302_v38 = vstv %s1444_s8 }
  0xdc   :  { %s1650_s10 = sld [smem:[#allocation2 + $0x6b]] }
  0xdd   :  { %v196_v45 = vstv %s2388_s0  ;;  %s2392_s14 = sld [smem:[#allocation43_spill]]  ;;  %v270_v1 = vadd.f32 %v269_v50, %v266_v49  ;;  %v373_v50 = vadd.f32 %v372_v33, %v369_v31 }
  0xde   :  { %2389 = sst [smem:[#allocation24_spill]] %s1640_s24  ;;  %v197_v59 = vadd.f32 %v196_v45, %v194_v44  ;;  %v427_v44 = vmul.f32 %v426_v25, %v1556_v27 }
  0xdf   :  { %s1654_s24 = sld [smem:[#allocation2 + $0x6c]]  ;;  %v215_v47 = vstv %s2390_s30 }
  0xe0   :  { %s1658_s2 = sld [smem:[#allocation2 + $0x6d]]  ;;  %v216_v37 = vadd.f32 %v215_v47, %v213_v46  ;;  %v1692_v13 = vmax.f32 %v197_v59, 0.0  ;;  %v430_v47 = vstv %s1611_s16  ;;  %v428_v58 = vadd.f32 %v427_v44, %v424_v43 }
  0xe1   :  { %v234_v52 = vstv %s2391_s4  ;;  %s2394_s3 = sld [smem:[#allocation46_spill]]  ;;  %v431_v59 = vmul.f32 %v430_v47, %v1558_v28  ;;  %v442_v44 = vstv %s1626_s11 }
  0xe2   :  { %s1665_s9 = sld [smem:[#allocation2 + $0x6e]]  ;;  %v235_v63 = vadd.f32 %v234_v52, %v232_v48  ;;  %v1694_v14 = vmax.f32 %v216_v37, 0.0  ;;  %v303_v48 = vmul.f32 %v302_v38, %v1452_v11  ;;  %v300_v37 = vadd.f32 %v299_v36, %v296_v35 }
  0xe3   :  { %s1669_s0 = sld [smem:[#allocation2 + $0x6f]]  ;;  %v253_v60 = vstv %s2392_s14  ;;  %v432_v15 = vadd.f32 %v431_v59, %v428_v58  ;;  %v446_v58 = vstv %s1632_s28 }
  0xe4   :  { %s2397_s21 = sld [smem:[#allocation47_spill]]  ;;  %v254_v8 = vadd.f32 %v253_v60, %v251_v55  ;;  %v1699_v16 = vmax.f32 %v235_v63, 0.0  ;;  %v434_v63 = vstv %s1616_s19  ;;  %v304_v18 = vadd.f32 %v303_v48, %v300_v37 }
  0xe5   :  { %s1673_s30 = sld [smem:[#allocation2 + $0xd1]]  ;;  %v435_v17 = vmul.f32 %v434_v63, %v1560_v29 }
  0xe6   :  { %2393 = sst [smem:[#allocation20_spill]] %s1658_s2  ;;  %v1710_v26 = vmax.f32 %v254_v8, 0.0 }
  0xe7   :  { %v272_v3 = vstv %s2394_s3  ;;  %s1679_s26 = sld [smem:[#allocation2 + $0x70]] }
  0xe8   :  { %2395 = sst [smem:[#allocation26_spill]] %s1665_s9  ;;  %v273_v20 = vadd.f32 %v272_v3, %v270_v1  ;;  %v377_v1 = vadd.f32 %v376_v51, %v373_v50 }
  0xe9   :  { %2396 = sst [smem:[#allocation27_spill]] %s1669_s0 }
  0xea   :  { %s1684_s4 = sld [smem:[#allocation2 + $0x71]]  ;;  %v287_v9 = vstv %s2397_s21  ;;  %v1727_v45 = vmax.f32 %v273_v20, 0.0 }
  0xeb   :  { %2398 = sst [smem:[#allocation25_spill]] %s1673_s30  ;;  %v288_v22 = vmul.f32 %v287_v9, %v1483_v32 }
  0xec   :  { %s1688_s25 = sld [smem:[#allocation2 + $0x72]] }
  0xed   :  { %s1697_s13 = sld [smem:[#allocation2 + $0x73]]  ;;  %v289_v46 = vadd.f32 %v288_v22, %v285_v21  ;;  %v486_v4 = vstv %s1679_s26 }
  0xee   :  { %s1704_s1 = sld [smem:[#allocation2 + $0x74]] }
  0xef   :  { %s2399_s14 = sld [smem:[#allocation50_spill]]  ;;  %v292_v38 = vadd.f32 %v291_v34, %v289_v46 }
  0xf0   :  { %s2400_s3 = sld [smem:[#allocation51_spill]]  ;;  %v489_v5 = vstv %s1684_s4 }
  0xf1   :  { %s1708_s5 = sld [smem:[#allocation2 + $0x75]] }
  0xf2   :  { %s1714_s18 = sld [smem:[#allocation2 + $0x76]]  ;;  %v493_v25 = vstv %s1688_s25 }
  0xf3   :  { %s2401_s21 = sld [smem:[#allocation52_spill]]  ;;  %v494_v47 = vmul.f32 %v493_v25, %v1556_v27  ;;  %v497_v46 = vstv %s1697_s13 }
  0xf4   :  { %s1720_s30 = sld [smem:[#allocation2 + $0x77]]  ;;  %v501_v63 = vstv %s1704_s1 }
  0xf5   :  { %s2402_s20 = sld [smem:[#allocation48_spill]]  ;;  %v314_v41 = vstv %s2399_s14 }
  0xf6   :  { %v317_v42 = vstv %s2400_s3  ;;  %s2403_s15 = sld [smem:[#allocation19_spill]]  ;;  %v315_v53 = vmul.f32 %v314_v41, %v1431_v0  ;;  %v436_v41 = vadd.f32 %v435_v17, %v432_v15  ;;  %v502_v17 = vmul.f32 %v501_v63, %v1560_v29 }
  0xf7   :  { %s1725_s0 = sld [smem:[#allocation2 + $0x78]]  ;;  %v318_v54 = vmul.f32 %v317_v42, %v1436_v2  ;;  %v439_v42 = vmul.f32 %v438_v19, %v1676_v62  ;;  %v505_v19 = vstv %s1708_s5 }
  0xf8   :  { %s2404_s9 = sld [smem:[#allocation53_spill]] }
  0xf9   :  { %s2405_s2 = sld [smem:[#allocation54_spill]]  ;;  %v321_v49 = vstv %s2401_s21  ;;  %v319_v6 = vadd.f32 %v318_v54, %v315_v53  ;;  %v1802_v53 = vmax.f32 %v292_v38, 0.0  ;;  %v407_v38 = vstv %s1576_s23 }
  0xfa   :  { %s1731_s8 = sld [smem:[#allocation2 + $0x79]]  ;;  %v322_v60 = vmul.f32 %v321_v49, %v1452_v11 }
  0xfb   :  { %s2406_s7 = sld [smem:[#allocation17_spill]]  ;;  %v306_v52 = vstv %s2402_s20 }
  0xfc   :  { %s1736_s14 = sld [smem:[#allocation2 + $0x7a]]  ;;  %v379_v55 = vstv %s2403_s15  ;;  %v307_v10 = vmul.f32 %v306_v52, %v1483_v32  ;;  %v323_v30 = vadd.f32 %v322_v60, %v319_v6 }
  0xfd   :  { %s1742_s16 = sld [smem:[#allocation2 + $0x7b]]  ;;  %v380_v3 = vmul.f32 %v379_v55, %v1692_v13  ;;  %v440_v55 = vadd.f32 %v439_v42, %v436_v41  ;;  %v506_v42 = vmul.f32 %v505_v19, %v1676_v62 }
  0xfe   :  { %v333_v56 = vstv %s2404_s9  ;;  %s2408_s3 = sld [smem:[#allocation13_spill]] }
  0xff   :  { %v336_v57 = vstv %s2405_s2  ;;  %s1747_s21 = sld [smem:[#allocation2 + $0x7c]]  ;;  %v334_v7 = vmul.f32 %v333_v56, %v1431_v0  ;;  %v487_v0 = vmul.f32 %v486_v4, %v1549_v23  ;;  %v381_v21 = vadd.f32 %v380_v3, %v377_v1 }
 0x100   :  { %s2409_s20 = sld [smem:[#allocation18_spill]]  ;;  %v337_v8 = vmul.f32 %v336_v57, %v1436_v2  ;;  %v490_v2 = vmul.f32 %v489_v5, %v1551_v24  ;;  %v443_v56 = vmul.f32 %v442_v44, %v1690_v12  ;;  %v509_v44 = vstv %s1714_s18 }
 0x101   :  { %v325_v61 = vstv %s2406_s7  ;;  %s1757_s2 = sld [smem:[#allocation2 + $0x7e]] }
 0x102   :  { %2407 = sst [smem:[#allocation31_spill]] %s1736_s14  ;;  %v326_v20 = vmul.f32 %v325_v61, %v1483_v32  ;;  %v338_v31 = vadd.f32 %v337_v8, %v334_v7  ;;  %v491_v36 = vadd.f32 %v490_v2, %v487_v0  ;;  %v444_v8 = vadd.f32 %v443_v56, %v440_v55 }
 0x103   :  { %s1752_s14 = sld [smem:[#allocation2 + $0x7d]]  ;;  %v513_v55 = vstv %s1720_s30 }
 0x104   :  { %v383_v9 = vstv %s2408_s3  ;;  %s1762_s9 = sld [smem:[#allocation2 + $0x7f]]  ;;  %v327_v49 = vadd.f32 %v326_v20, %v323_v30  ;;  %v495_v59 = vadd.f32 %v494_v47, %v491_v36 }
 0x105   :  { %s2411_s19 = sld [smem:[#allocation14_spill]]  ;;  %v384_v22 = vmul.f32 %v383_v9, %v1694_v14  ;;  %v447_v9 = vmul.f32 %v446_v58, %v1692_v13 }
 0x106   :  { %v340_v40 = vstv %s2409_s20  ;;  %s1767_s26 = sld [smem:[#allocation2 + $0xd2]] }
 0x107   :  { %s2413_s4 = sld [smem:[#allocation11_spill]]  ;;  %v341_v33 = vmul.f32 %v340_v40, %v1452_v11  ;;  %v308_v11 = vadd.f32 %v307_v10, %v304_v18  ;;  %v385_v48 = vadd.f32 %v384_v22, %v381_v21  ;;  %v399_v10 = vstv %s1563_s27 }
 0x108   :  { %s1772_s15 = sld [smem:[#allocation2 + $0x80]]  ;;  %v450_v40 = vstv %s1636_s17  ;;  %v400_v30 = vmul.f32 %v399_v10, %v1802_v53 }
 0x109   :  { %s2414_s7 = sld [smem:[#allocation49_spill]]  ;;  %v342_v50 = vadd.f32 %v341_v33, %v338_v31  ;;  %v403_v31 = vstv %s1568_s29  ;;  %v448_v33 = vadd.f32 %v447_v9, %v444_v8 }
 0x10a   :  { %2410 = sst [smem:[#allocation28_spill]] %s1762_s9 }
 0x10b   :  { %s1777_s3 = sld [smem:[#allocation2 + $0x81]]  ;;  %v387_v35 = vstv %s2411_s19 }
 0x10c   :  { %2412 = sst [smem:[#allocation35_spill]] %s1767_s26  ;;  %v388_v34 = vmul.f32 %v387_v35, %v1699_v16  ;;  %v451_v35 = vmul.f32 %v450_v40, %v1694_v14 }
 0x10d   :  { %s1781_s22 = sld [smem:[#allocation2 + $0x82]]  ;;  %v344_v39 = vstv %s2413_s4 }
 0x10e   :  { %s2415_s20 = sld [smem:[#allocation16_spill]]  ;;  %v345_v51 = vmul.f32 %v344_v39, %v1483_v32  ;;  %v498_v32 = vmul.f32 %v497_v46, %v1558_v28  ;;  %v389_v60 = vadd.f32 %v388_v34, %v385_v48  ;;  %v553_v4 = vstv %s1772_s15 }
 0x10f   :  { %s1787_s26 = sld [smem:[#allocation2 + $0x83]]  ;;  %v310_v43 = vstv %s2414_s7  ;;  %v554_v0 = vmul.f32 %v553_v4, %v1549_v23  ;;  %v452_v46 = vadd.f32 %v451_v35, %v448_v33 }
 0x110   :  { %s2416_s25 = sld [smem:[#allocation15_spill]]  ;;  %v311_v37 = vadd.f32 %v310_v43, %v308_v11  ;;  %v346_v3 = vadd.f32 %v345_v51, %v342_v50  ;;  %v499_v15 = vadd.f32 %v498_v32, %v495_v59  ;;  %v458_v50 = vstv %s1645_s6 }
 0x111   :  { %s1792_s9 = sld [smem:[#allocation2 + $0x84]]  ;;  %v556_v5 = vstv %s1777_s3  ;;  %v459_v32 = vmul.f32 %v458_v50, %v1710_v26 }
 0x112   :  { %s2417_s19 = sld [smem:[#allocation21_spill]]  ;;  %v557_v2 = vmul.f32 %v556_v5, %v1551_v24  ;;  %v1836_v20 = vmax.f32 %v311_v37, 0.0  ;;  %v503_v41 = vadd.f32 %v502_v17, %v499_v15  ;;  %v462_v37 = vstv %s1650_s10 }
 0x113   :  { %s1796_s12 = sld [smem:[#allocation2 + $0x85]]  ;;  %v560_v25 = vstv %s1781_s22 }
 0x114   :  { %v391_v52 = vstv %s2415_s20  ;;  %s1800_s11 = sld [smem:[#allocation2 + $0x86]]  ;;  %v558_v36 = vadd.f32 %v557_v2, %v554_v0  ;;  %v561_v47 = vmul.f32 %v560_v25, %v1556_v27  ;;  %v404_v34 = vmul.f32 %v403_v31, %v1836_v20 }
 0x115   :  { %s1806_s4 = sld [smem:[#allocation2 + $0x87]]  ;;  %v392_v61 = vmul.f32 %v391_v52, %v1710_v26  ;;  %v564_v48 = vstv %s1787_s26  ;;  %v507_v52 = vadd.f32 %v506_v42, %v503_v41  ;;  %v466_v25 = vstv %s1654_s24 }
 0x116   :  { %v329_v54 = vstv %s2416_s25  ;;  %s2418_s13 = sld [smem:[#allocation12_spill]]  ;;  %v562_v58 = vadd.f32 %v561_v47, %v558_v36  ;;  %v565_v59 = vmul.f32 %v564_v48, %v1558_v28  ;;  %v521_v41 = vstv %s1731_s8 }
 0x117   :  { %s1811_s7 = sld [smem:[#allocation2 + $0x88]]  ;;  %v330_v1 = vadd.f32 %v329_v54, %v327_v49  ;;  %v393_v18 = vadd.f32 %v392_v61, %v389_v60  ;;  %v510_v54 = vmul.f32 %v509_v44, %v1690_v12  ;;  %v568_v60 = vstv %s1792_s9 }
 0x118   :  { %v395_v57 = vstv %s2417_s19  ;;  %s1815_s20 = sld [smem:[#allocation2 + $0x89]]  ;;  %v566_v9 = vadd.f32 %v565_v59, %v562_v58  ;;  %v569_v10 = vmul.f32 %v568_v60, %v1560_v29 }
 0x119   :  { %s1819_s28 = sld [smem:[#allocation2 + $0x8a]]  ;;  %v396_v7 = vmul.f32 %v395_v57, %v1727_v45  ;;  %v1838_v21 = vmax.f32 %v330_v1, 0.0  ;;  %v514_v1 = vmul.f32 %v513_v55, %v1692_v13  ;;  %v511_v5 = vadd.f32 %v510_v54, %v507_v52 }
 0x11a   :  { %s1824_s25 = sld [smem:[#allocation2 + $0x8b]]  ;;  %v572_v17 = vstv %s1796_s12  ;;  %v570_v42 = vadd.f32 %v569_v10, %v566_v9  ;;  %v576_v36 = vstv %s1800_s11  ;;  %v522_v55 = vmul.f32 %v521_v41, %v1699_v16 }
 0x11b   :  { %s1829_s1 = sld [smem:[#allocation2 + $0x8c]]  ;;  %v397_v43 = vadd.f32 %v396_v7, %v393_v18  ;;  %v408_v51 = vmul.f32 %v407_v38, %v1838_v21  ;;  %v515_v31 = vadd.f32 %v514_v1, %v511_v5 }
 0x11c   :  { %v348_v6 = vstv %s2418_s13  ;;  %s2419_s15 = sld [smem:[#allocation24_spill]] }
 0x11d   :  { %s1834_s3 = sld [smem:[#allocation2 + $0x8d]]  ;;  %v349_v22 = vadd.f32 %v348_v6, %v346_v3  ;;  %v401_v56 = vadd.f32 %v400_v30, %v397_v43  ;;  %v517_v6 = vstv %s1725_s0  ;;  %v573_v43 = vmul.f32 %v572_v17, %v1676_v62 }
 0x11e   :  { %s1841_s27 = sld [smem:[#allocation2 + $0x8e]]  ;;  %v518_v33 = vmul.f32 %v517_v6, %v1694_v14  ;;  %v588_v41 = vstv %s1815_s20 }
 0x11f   :  { %s1846_s17 = sld [smem:[#allocation2 + $0x8f]]  ;;  %v1857_v11 = vmax.f32 %v349_v22, 0.0  ;;  %v405_v2 = vadd.f32 %v404_v34, %v401_v56  ;;  %v574_v59 = vadd.f32 %v573_v43, %v570_v42 }
 0x120   :  { %s1851_s5 = sld [smem:[#allocation2 + $0x90]]  ;;  %v519_v54 = vadd.f32 %v518_v33, %v515_v31 }
 0x121   :  { %s2420_s29 = sld [smem:[#allocation22_spill]]  ;;  %v409_v34 = vadd.f32 %v408_v51, %v405_v2  ;;  %v577_v51 = vmul.f32 %v576_v36, %v1690_v12 }
 0x122   :  { %v454_v39 = vstv %s2419_s15  ;;  %s1855_s22 = sld [smem:[#allocation2 + $0x91]]  ;;  %v523_v6 = vadd.f32 %v522_v55, %v519_v54  ;;  %v537_v55 = vstv %s1752_s14 }
 0x123   :  { %s1860_s23 = sld [smem:[#allocation2 + $0x92]]  ;;  %v455_v49 = vmul.f32 %v454_v39, %v1699_v16  ;;  %v463_v39 = vmul.f32 %v462_v37, %v1727_v45  ;;  %v580_v37 = vstv %s1806_s4  ;;  %v578_v10 = vadd.f32 %v577_v51, %v574_v59 }
 0x124   :  { %s1865_s18 = sld [smem:[#allocation2 + $0x93]] }
 0x125   :  { %s1870_s26 = sld [smem:[#allocation2 + $0x94]]  ;;  %v456_v63 = vadd.f32 %v455_v49, %v452_v46  ;;  %v467_v46 = vmul.f32 %v466_v25, %v1802_v53 }
 0x126   :  { %s1874_s6 = sld [smem:[#allocation2 + $0x95]]  ;;  %v620_v61 = vstv %s1851_s5 }
 0x127   :  { %v411_v57 = vstv %s2420_s29  ;;  %s1879_s19 = sld [smem:[#allocation2 + $0xd3]]  ;;  %v621_v3 = vmul.f32 %v620_v61, %v1549_v23  ;;  %v460_v44 = vadd.f32 %v459_v32, %v456_v63 }
 0x128   :  { %v623_v4 = vstv %s1855_s22  ;;  %s1885_s30 = sld [smem:[#allocation2 + $0x96]]  ;;  %v412_v22 = vmul.f32 %v411_v57, %v1857_v11 }
 0x129   :  { %v624_v7 = vmul.f32 %v623_v4, %v1551_v24  ;;  %v627_v8 = vstv %s1860_s23  ;;  %s1890_s10 = sld [smem:[#allocation2 + $0x97]]  ;;  %v464_v32 = vadd.f32 %v463_v39, %v460_v44 }
 0x12a   :  { %v628_v40 = vmul.f32 %v627_v8, %v1556_v27  ;;  %v631_v15 = vstv %s1865_s18  ;;  %s1895_s9 = sld [smem:[#allocation2 + $0x98]]  ;;  %v1938_v63 = vadd.f32 %v412_v22, %v409_v34  ;;  %v529_v8 = vstv %s1742_s16 }
 0x12b   :  { %v625_v18 = vadd.f32 %v624_v7, %v621_v3  ;;  %v632_v19 = vmul.f32 %v631_v15, %v1558_v28  ;;  %v635_v0 = vstv %s1870_s26  ;;  %s1900_s0 = sld [smem:[#allocation2 + $0x99]]  ;;  %v584_v15 = vstv %s1811_s7 }
 0x12c   :  { %v639_v30 = vstv %s1874_s6  ;;  %s1905_s13 = sld [smem:[#allocation2 + $0x9a]]  ;;  %v636_v38 = vmul.f32 %v635_v0, %v1560_v29  ;;  %v468_v17 = vadd.f32 %v467_v46, %v464_v32  ;;  %v530_v2 = vmul.f32 %v529_v8, %v1727_v45 }
 0x12d   :  { %s2421_s15 = sld [smem:[#allocation20_spill]]  ;;  %v629_v35 = vadd.f32 %v628_v40, %v625_v18  ;;  %v640_v48 = vmul.f32 %v639_v30, %v1676_v62  ;;  %v581_v40 = vmul.f32 %v580_v37, %v1692_v13  ;;  %v533_v22 = vstv %s1747_s21 }
 0x12e   :  { %s1909_s12 = sld [smem:[#allocation2 + $0x9b]]  ;;  %v643_v50 = vstv %s1885_s30  ;;  %v585_v33 = vmul.f32 %v584_v15, %v1694_v14  ;;  %v534_v54 = vmul.f32 %v533_v22, %v1802_v53  ;;  %v592_v32 = vstv %s1819_s28 }
 0x12f   :  { %s2422_s5 = sld [smem:[#allocation26_spill]]  ;;  %v633_v47 = vadd.f32 %v632_v19, %v629_v35  ;;  %v644_v61 = vmul.f32 %v643_v50, %v1690_v12  ;;  %v647_v4 = vstv %s1890_s10  ;;  %v582_v39 = vadd.f32 %v581_v40, %v578_v10 }
 0x130   :  { %s1914_s24 = sld [smem:[#allocation2 + $0x9c]]  ;;  %v648_v0 = vmul.f32 %v647_v4, %v1692_v13  ;;  %v651_v25 = vstv %s1895_s9  ;;  %v538_v10 = vmul.f32 %v537_v55, %v1836_v20  ;;  %v541_v40 = vstv %s1757_s2 }
 0x131   :  { %s2423_s29 = sld [smem:[#allocation27_spill]]  ;;  %v637_v56 = vadd.f32 %v636_v38, %v633_v47  ;;  %v652_v36 = vmul.f32 %v651_v25, %v1694_v14  ;;  %v655_v34 = vstv %s1900_s0  ;;  %v596_v25 = vstv %s1824_s25 }
 0x132   :  { %s2424_s22 = sld [smem:[#allocation31_spill]]  ;;  %v659_v4 = vstv %s1905_s13  ;;  %v604_v55 = vstv %s1834_s3 }
 0x133   :  { %s1918_s23 = sld [smem:[#allocation2 + $0x9d]]  ;;  %v470_v49 = vstv %s2421_s15  ;;  %v641_v60 = vadd.f32 %v640_v48, %v637_v56 }
 0x134   :  { %s1923_s8 = sld [smem:[#allocation2 + $0x9e]]  ;;  %v471_v3 = vmul.f32 %v470_v49, %v1836_v20 }
 0x135   :  { %v474_v52 = vstv %s2422_s5  ;;  %s2425_s18 = sld [smem:[#allocation23_spill]]  ;;  %v645_v19 = vadd.f32 %v644_v61, %v641_v60  ;;  %v656_v60 = vmul.f32 %v655_v34, %v1699_v16 }
 0x136   :  { %s1927_s11 = sld [smem:[#allocation2 + $0x9f]]  ;;  %v475_v5 = vmul.f32 %v474_v52, %v1838_v21  ;;  %v472_v52 = vadd.f32 %v471_v3, %v468_v17  ;;  %v667_v34 = vstv %s1914_s24 }
 0x137   :  { %v478_v57 = vstv %s2423_s29  ;;  %s1932_s26 = sld [smem:[#allocation2 + $0xa0]]  ;;  %v649_v44 = vadd.f32 %v648_v0, %v645_v19  ;;  %v593_v19 = vmul.f32 %v592_v32, %v1710_v26 }
 0x138   :  { %v525_v58 = vstv %s2424_s22  ;;  %s1936_s6 = sld [smem:[#allocation2 + $0xa1]]  ;;  %v1951_v9 = vmul.f32 %v478_v57, %v1857_v11  ;;  %v586_v57 = vadd.f32 %v585_v33, %v582_v39  ;;  %v476_v8 = vadd.f32 %v475_v5, %v472_v52 }
 0x139   :  { %s2426_s30 = sld [smem:[#allocation25_spill]]  ;;  %v526_v7 = vmul.f32 %v525_v58, %v1710_v26  ;;  %v589_v58 = vmul.f32 %v588_v41, %v1699_v16  ;;  %v653_v37 = vadd.f32 %v652_v36, %v649_v44  ;;  %v663_v33 = vstv %s1909_s12 }
 0x13a   :  { %s1943_s15 = sld [smem:[#allocation2 + $0xa2]]  ;;  %v2029_v41 = vadd.f32 %v1951_v9, %v476_v8  ;;  %v597_v36 = vmul.f32 %v596_v25, %v1727_v45  ;;  %v664_v9 = vmul.f32 %v663_v33, %v1727_v45  ;;  %v675_v33 = vstv %s1923_s8 }
 0x13b   :  { %v415_v1 = vstv %s2425_s18  ;;  %s1948_s4 = sld [smem:[#allocation2 + $0xa3]]  ;;  %v527_v31 = vadd.f32 %v526_v7, %v523_v6  ;;  %v590_v17 = vadd.f32 %v589_v58, %v586_v57  ;;  %v657_v5 = vadd.f32 %v656_v60, %v653_v37 }
 0x13c   :  { %s1955_s10 = sld [smem:[#allocation2 + $0xa4]]  ;;  %v2026_v39 = vadd.f32 %v415_v1, %v1938_v63  ;;  %v671_v60 = vstv %s1918_s23 }
 0x13d   :  { %s1959_s16 = sld [smem:[#allocation2 + $0xa5]]  ;;  %v687_v30 = vstv %s1932_s26  ;;  %v531_v3 = vadd.f32 %v530_v2, %v527_v31  ;;  %v594_v44 = vadd.f32 %v593_v19, %v590_v17 }
 0x13e   :  { %s1965_s5 = sld [smem:[#allocation2 + $0xa6]]  ;;  %v688_v35 = vmul.f32 %v687_v30, %v1549_v23  ;;  %v690_v38 = vstv %s1936_s6  ;;  %v660_v30 = vmul.f32 %v659_v4, %v1710_v26 }
 0x13f   :  { %v482_v18 = vstv %s2426_s30  ;;  %s1970_s7 = sld [smem:[#allocation2 + $0xa7]]  ;;  %v691_v42 = vmul.f32 %v690_v38, %v1551_v24  ;;  %v535_v31 = vadd.f32 %v534_v54, %v531_v3  ;;  %v598_v58 = vadd.f32 %v597_v36, %v594_v44 }
 0x140   :  { %s1973_s29 = sld [smem:[#allocation2 + $0xd4]]  ;;  %v694_v43 = vstv %s1943_s15  ;;  %v661_v1 = vadd.f32 %v660_v30, %v657_v5  ;;  %v672_v5 = vmul.f32 %v671_v60, %v1836_v20 }
 0x141   :  { %v695_v47 = vmul.f32 %v694_v43, %v1556_v27  ;;  %v698_v48 = vstv %s1948_s4  ;;  %s1980_s21 = sld [smem:[#allocation2 + $0xa8]]  ;;  %v692_v46 = vadd.f32 %v691_v42, %v688_v35  ;;  %v542_v42 = vmul.f32 %v541_v40, %v1838_v21 }
 0x142   :  { %v699_v49 = vmul.f32 %v698_v48, %v1558_v28  ;;  %v702_v50 = vstv %s1955_s10  ;;  %s1985_s20 = sld [smem:[#allocation2 + $0xa9]]  ;;  %v665_v37 = vadd.f32 %v664_v9, %v661_v1 }
 0x143   :  { %v706_v56 = vstv %s1959_s16  ;;  %s1990_s9 = sld [smem:[#allocation2 + $0xaa]]  ;;  %v696_v59 = vadd.f32 %v695_v47, %v692_v46  ;;  %v703_v51 = vmul.f32 %v702_v50, %v1560_v29  ;;  %v600_v47 = vstv %s1829_s1 }
 0x144   :  { %s1994_s0 = sld [smem:[#allocation2 + $0xab]]  ;;  %v710_v61 = vstv %s1965_s5  ;;  %v707_v7 = vmul.f32 %v706_v56, %v1676_v62  ;;  %v539_v46 = vadd.f32 %v538_v10, %v535_v31  ;;  %v601_v54 = vmul.f32 %v600_v47, %v1802_v53 }
 0x145   :  { %s1999_s22 = sld [smem:[#allocation2 + $0xac]]  ;;  %v700_v6 = vadd.f32 %v699_v49, %v696_v59  ;;  %v714_v15 = vstv %s1970_s7  ;;  %v711_v2 = vmul.f32 %v710_v61, %v1690_v12  ;;  %v668_v59 = vmul.f32 %v667_v34, %v1802_v53 }
 0x146   :  { %s2427_s14 = sld [smem:[#allocation28_spill]]  ;;  %v715_v38 = vmul.f32 %v714_v15, %v1692_v13  ;;  %v543_v19 = vadd.f32 %v542_v42, %v539_v46  ;;  %v602_v25 = vadd.f32 %v601_v54, %v598_v58 }
 0x147   :  { %s2003_s26 = sld [smem:[#allocation2 + $0xad]]  ;;  %v704_v0 = vadd.f32 %v703_v51, %v700_v6  ;;  %v718_v43 = vstv %s1980_s21 }
 0x148   :  { %s2008_s28 = sld [smem:[#allocation2 + $0xae]]  ;;  %v719_v52 = vmul.f32 %v718_v43, %v1694_v14  ;;  %v722_v56 = vstv %s1985_s20  ;;  %v669_v43 = vadd.f32 %v668_v59, %v665_v37  ;;  %v679_v37 = vstv %s1927_s11 }
 0x149   :  { %s2012_s13 = sld [smem:[#allocation2 + $0xaf]]  ;;  %v708_v35 = vadd.f32 %v707_v7, %v704_v0  ;;  %v723_v6 = vmul.f32 %v722_v56, %v1699_v16  ;;  %v726_v10 = vstv %s1990_s9  ;;  %v605_v0 = vmul.f32 %v604_v55, %v1836_v20 }
 0x14a   :  { %s2017_s2 = sld [smem:[#allocation2 + $0xb0]]  ;;  %v730_v44 = vstv %s1994_s0  ;;  %v673_v56 = vadd.f32 %v672_v5, %v669_v43 }
 0x14b   :  { %s2021_s6 = sld [smem:[#allocation2 + $0xb1]]  ;;  %v712_v48 = vadd.f32 %v711_v2, %v708_v35  ;;  %v608_v2 = vstv %s1841_s27  ;;  %v606_v46 = vadd.f32 %v605_v0, %v602_v25 }
 0x14c   :  { %v545_v22 = vstv %s2427_s14  ;;  %s2428_s25 = sld [smem:[#allocation35_spill]]  ;;  %v609_v9 = vmul.f32 %v608_v2, %v1838_v21 }
 0x14d   :  { %s2033_s15 = sld [smem:[#allocation2 + $0xb2]]  ;;  %v546_v63 = vmul.f32 %v545_v22, %v1857_v11  ;;  %v716_v50 = vadd.f32 %v715_v38, %v712_v48  ;;  %v727_v38 = vmul.f32 %v726_v10, %v1710_v26  ;;  %v2095_v48 = vadd.f32 %v482_v18, %v2029_v41 }
 0x14e   :  { %s2037_s12 = sld [smem:[#allocation2 + $0xb3]]  ;;  %v676_v18 = vmul.f32 %v675_v33, %v1838_v21  ;;  %v742_v2 = vstv %s2008_s28 }
 0x14f   :  { %s2042_s18 = sld [smem:[#allocation2 + $0xb4]]  ;;  %v720_v4 = vadd.f32 %v719_v52, %v716_v50  ;;  %v547_v1 = vadd.f32 %v546_v63, %v543_v19  ;;  %v612_v50 = vstv %s1846_s17  ;;  %v731_v63 = vmul.f32 %v730_v44, %v1727_v45 }
 0x150   :  { %s2046_s1 = sld [smem:[#allocation2 + $0xb5]]  ;;  %v754_v57 = vstv %s2017_s2 }
 0x151   :  { %s2052_s4 = sld [smem:[#allocation2 + $0xb6]]  ;;  %v755_v51 = vmul.f32 %v754_v57, %v1549_v23  ;;  %v757_v32 = vstv %s2021_s6  ;;  %v724_v35 = vadd.f32 %v723_v6, %v720_v4  ;;  %v734_v57 = vstv %s1999_s22 }
 0x152   :  { %v549_v49 = vstv %s2428_s25  ;;  %s2057_s24 = sld [smem:[#allocation2 + $0xb7]]  ;;  %v758_v61 = vmul.f32 %v757_v32, %v1551_v24  ;;  %v616_v32 = vstv %s1879_s19  ;;  %v735_v10 = vmul.f32 %v734_v57, %v1802_v53 }
 0x153   :  { %s2060_s10 = sld [smem:[#allocation2 + $0xd5]]  ;;  %v761_v3 = vstv %s2033_s15  ;;  %v728_v41 = vadd.f32 %v727_v38, %v724_v35 }
 0x154   :  { %v762_v7 = vmul.f32 %v761_v3, %v1556_v27  ;;  %v765_v8 = vstv %s2037_s12  ;;  %s2067_s3 = sld [smem:[#allocation2 + $0xb8]]  ;;  %v759_v40 = vadd.f32 %v758_v61, %v755_v51  ;;  %v613_v51 = vmul.f32 %v612_v50, %v1857_v11 }
 0x155   :  { %v766_v15 = vmul.f32 %v765_v8, %v1558_v28  ;;  %v769_v17 = vstv %s2042_s18  ;;  %s2072_s23 = sld [smem:[#allocation2 + $0xb9]]  ;;  %v2122_v61 = vadd.f32 %v549_v49, %v547_v1  ;;  %v738_v3 = vstv %s2003_s26 }
 0x156   :  { %v773_v22 = vstv %s2046_s1  ;;  %s2077_s16 = sld [smem:[#allocation2 + $0xba]]  ;;  %v763_v30 = vadd.f32 %v762_v7, %v759_v40  ;;  %v770_v31 = vmul.f32 %v769_v17, %v1560_v29  ;;  %v610_v7 = vadd.f32 %v609_v9, %v606_v46 }
 0x157   :  { %s2081_s5 = sld [smem:[#allocation2 + $0xbb]]  ;;  %v777_v42 = vstv %s2052_s4  ;;  %v774_v47 = vmul.f32 %v773_v22, %v1676_v62  ;;  %v732_v8 = vadd.f32 %v731_v63, %v728_v41  ;;  %v680_v49 = vmul.f32 %v679_v37, %v1857_v11 }
 0x158   :  { %s2086_s27 = sld [smem:[#allocation2 + $0xbc]]  ;;  %v767_v36 = vadd.f32 %v766_v15, %v763_v30  ;;  %v781_v34 = vstv %s2057_s24  ;;  %v778_v54 = vmul.f32 %v777_v42, %v1690_v12  ;;  %v677_v15 = vadd.f32 %v676_v18, %v673_v56 }
 0x159   :  { %s2090_s7 = sld [smem:[#allocation2 + $0xbd]]  ;;  %v782_v59 = vmul.f32 %v781_v34, %v1692_v13  ;;  %v739_v0 = vmul.f32 %v738_v3, %v1836_v20  ;;  %v736_v35 = vadd.f32 %v735_v10, %v732_v8  ;;  %v614_v50 = vadd.f32 %v613_v51, %v610_v7 }
 0x15a   :  { %s2099_s8 = sld [smem:[#allocation2 + $0xbe]]  ;;  %v771_v52 = vadd.f32 %v770_v31, %v767_v36  ;;  %v785_v55 = vstv %s2067_s3  ;;  %v743_v18 = vmul.f32 %v742_v2, %v1838_v21 }
 0x15b   :  { %s2103_s21 = sld [smem:[#allocation2 + $0xbf]]  ;;  %v789_v60 = vstv %s2072_s23  ;;  %v786_v6 = vmul.f32 %v785_v55, %v1694_v14 }
 0x15c   :  { %s2108_s30 = sld [smem:[#allocation2 + $0xc0]]  ;;  %v775_v58 = vadd.f32 %v774_v47, %v771_v52  ;;  %v793_v40 = vstv %s2077_s16  ;;  %v790_v19 = vmul.f32 %v789_v60, %v1699_v16  ;;  %v683_v60 = vstv %s1973_s29 }
 0x15d   :  { %s2112_s17 = sld [smem:[#allocation2 + $0xc1]]  ;;  %v797_v22 = vstv %s2081_s5  ;;  %v794_v30 = vmul.f32 %v793_v40, %v1710_v26 }
 0x15e   :  { %s2118_s20 = sld [smem:[#allocation2 + $0xc2]]  ;;  %v779_v4 = vadd.f32 %v778_v54, %v775_v58  ;;  %v801_v38 = vstv %s2086_s27  ;;  %v798_v36 = vmul.f32 %v797_v22, %v1727_v45  ;;  %v681_v58 = vadd.f32 %v680_v49, %v677_v15 }
 0x15f   :  { %s2126_s9 = sld [smem:[#allocation2 + $0xc3]]  ;;  %v802_v52 = vmul.f32 %v801_v38, %v1802_v53 }
 0x160   :  { %s2130_s11 = sld [smem:[#allocation2 + $0xc4]]  ;;  %v783_v17 = vadd.f32 %v782_v59, %v779_v4  ;;  %v809_v56 = vstv %s2099_s8  ;;  %v746_v59 = vstv %s2012_s13  ;;  %v2196_v49 = vadd.f32 %v683_v60, %v681_v58 }
 0x161   :  { %s2134_s0 = sld [smem:[#allocation2 + $0xc5]]  ;;  %v813_v7 = vstv %s2103_s21  ;;  %v747_v40 = vmul.f32 %v746_v59, %v1857_v11 }
 0x162   :  { %v821_v25 = vstv %s2108_s30  ;;  %s2140_s22 = sld [smem:[#allocation2 + $0xc6]]  ;;  %v787_v5 = vadd.f32 %v786_v6, %v783_v17  ;;  %v810_v6 = vmul.f32 %v809_v56, %v1838_v21  ;;  %v685_v38 = vmax.f32 %v2196_v49, 0.0 }
 0x163   :  { %v822_v31 = vmul.f32 %v821_v25, %v1549_v23  ;;  %v824_v33 = vstv %s2112_s17  ;;  %s2145_s14 = sld [smem:[#allocation2 + $0xc7]]  ;;  %v805_v23 = vstv %s2090_s7 }
 0x164   :  { %s2148_s26 = sld [smem:[#allocation2 + $0xd6]]  ;;  %v825_v42 = vmul.f32 %v824_v33, %v1551_v24  ;;  %v828_v43 = vstv %s2118_s20  ;;  %v791_v44 = vadd.f32 %v790_v19, %v787_v5  ;;  %v806_v55 = vmul.f32 %v805_v23, %v1836_v20 }
 0x165   :  { %v829_v47 = vmul.f32 %v828_v43, %v1556_v27  ;;  %v832_v1 = vstv %s2126_s9  ;;  %s2155_s28 = sld [smem:[#allocation2 + $0xc8]]  ;;  %v740_v27 = vadd.f32 %v739_v0, %v736_v35  ;;  %v814_v0 = vmul.f32 %v813_v7, %v1857_v11 }
 0x166   :  { %v826_v9 = vadd.f32 %v825_v42, %v822_v31  ;;  %v833_v34 = vmul.f32 %v832_v1, %v1558_v28  ;;  %v836_v46 = vstv %s2130_s11  ;;  %s2160_s2 = sld [smem:[#allocation2 + $0xc9]]  ;;  %v795_v24 = vadd.f32 %v794_v30, %v791_v44 }
 0x167   :  { %v840_v54 = vstv %s2134_s0  ;;  %s2164_s6 = sld [smem:[#allocation2 + $0xca]]  ;;  %v837_v28 = vmul.f32 %v836_v46, %v1560_v29  ;;  %v2181_v29 = vadd.f32 %v616_v32, %v614_v50  ;;  %v551_v31 = vmax.f32 %v2122_v61, 0.0  ;;  %s1276_s0 = smov [#allocation7]  }
 0x168   :  { %v830_v41 = vadd.f32 %v829_v47, %v826_v9  ;;  %s2168_s25 = sld [smem:[#allocation2 + $0xcb]]  ;;  %v799_v63 = vadd.f32 %v798_v36, %v795_v24  ;;  %v844_v57 = vstv %s2140_s22  ;;  %v841_v37 = vmul.f32 %v840_v54, %v1676_v62  ;;  %s963_s22 = sshll.u32 %s1276_s0, 4  ;;  %s964_s22 = int_to_ptr.vmem [resolvable:$true] %s963_s22 }
 0x169   :  { %s2173_s15 = sld [smem:[#allocation2 + $0xcc]]  ;;  %v848_v4 = vstv %s2145_s14  ;;  %v845_v10 = vmul.f32 %v844_v57, %v1690_v12  ;;  %v744_v62 = vadd.f32 %v743_v18, %v740_v27  ;;  %v417_v12 = vmax.f32 %v2026_v39, 0.0  ;;  %s1246_s14 = scalar_lea.vmem %s964_s22, 256 }
 0x16a   :  { %v834_v51 = vadd.f32 %v833_v34, %v830_v41  ;;  %s2177_s12 = sld [smem:[#allocation2 + $0xcd]]  ;;  %v803_v3 = vadd.f32 %v802_v52, %v799_v63  ;;  %v849_v19 = vmul.f32 %v848_v4, %v1692_v13  ;;  %v484_v13 = vmax.f32 %v2095_v48, 0.0  ;;  %p1247_p5 = scmp.ne.s32.totalorder %s964_s22, %s1246_s14 }
 0x16b   :  { %s2185_s18 = sld [smem:[#allocation2 + $0xce]]  ;;  %v852_v15 = vstv %s2155_s28  ;;  %v618_v33 = vmax.f32 %v2181_v29, 0.0  ;;  %v748_v35 = vadd.f32 %v747_v40, %v744_v62  ;;  %v750_v42 = vstv %s2060_s10  ;;  %p1251_p6 = scmp.lt.s32.totalorder %s964_s22, %s964_s22 }
 0x16c   :  { %v838_v8 = vadd.f32 %v837_v28, %v834_v51  ;;  %s2190_s13 = sld [smem:[#allocation2 + $0xcf]]  ;;  %v807_v32 = vadd.f32 %v806_v55, %v803_v3  ;;  %v856_v2 = vstv %s2160_s2  ;;  %v853_v5 = vmul.f32 %v852_v15, %v1694_v14  ;;  %p1252_p7 = scmp.lt.s32.totalorder %s1246_s14, %s1246_s14 }
 0x16d   :  { %s2194_s19 = sld [smem:[#allocation2 + $0xd8]]  ;;  %v860_v30 = vstv %s2164_s6  ;;  %v857_v14 = vmul.f32 %v856_v2, %v1699_v16  ;;  %v817_v44 = vstv %s2148_s26  ;;  %v2231_v16 = vadd.f32 %v750_v42, %v748_v35 }
 0x16e   :  { %v842_v17 = vadd.f32 %v841_v37, %v838_v8  ;;  %s2199_s29 = sld [smem:[#allocation2 + $0xd9]]  ;;  %v811_v22 = vadd.f32 %v810_v6, %v807_v32  ;;  %v861_v36 = vmul.f32 %v860_v30, %v1710_v26  ;;  %v864_v47 = vstv %s2168_s25  ;;  %p1253_p8 = por %p1252_p7, %p1251_p6 }
 0x16f   :  { %s2204_s1 = sld [smem:[#allocation2 + $0xda]]  ;;  %v868_v50 = vstv %s2173_s15  ;;  %v865_v54 = vmul.f32 %v864_v47, %v1727_v45  ;;  %v752_v45 = vmax.f32 %v2231_v16, 0.0 }
 0x170   :  { %v846_v25 = vadd.f32 %v845_v10, %v842_v17  ;;  %s2208_s4 = sld [smem:[#allocation2 + $0xdb]]  ;;  %v815_v23 = vadd.f32 %v814_v0, %v811_v22  ;;  %v872_v41 = vstv %s2177_s12  ;;  %v869_v58 = vmul.f32 %v868_v50, %v1802_v53  ;;  %p1254_p9 = pnand %p1253_p8, %p1247_p5 }
 0x171   :  { %s2213_s24 = sld [smem:[#allocation2 + $0xdc]]  ;;  %v876_v59 = vstv %s2185_s18  ;;  %v873_v3 = vmul.f32 %v872_v41, %v1836_v20 }
 0x172   :  { %v850_v43 = vadd.f32 %v849_v19, %v846_v25  ;;  %s2218_s3 = sld [smem:[#allocation2 + $0xdd]]  ;;  %v818_v56 = vadd.f32 %v817_v44, %v815_v23  ;;  %v880_v51 = vstv %s2190_s13  ;;  %v877_v53 = vmul.f32 %v876_v59, %v1838_v21 }
 0x173   :  { %s2223_s23 = sld [smem:[#allocation2 + $0xd7]]  ;;  %v888_v1 = vstv %s2194_s19  ;;  %v881_v62 = vmul.f32 %v880_v51, %v1857_v11 }
 0x174   :  { %v854_v9 = vadd.f32 %v853_v5, %v850_v43  ;;  %v889_v34 = vmul.f32 %v888_v1, %v417_v12  ;;  %v891_v46 = vstv %s2199_s29  ;;  %s2229_s10 = sld [smem:[#allocation2 + $0xde]]  ;;  %v819_v8 = vmax.f32 %v818_v56, 0.0 }
 0x175   :  { %v892_v26 = vmul.f32 %v891_v46, %v484_v13  ;;  %v895_v24 = vstv %s2204_s1  ;;  %s2237_s16 = sld [smem:[#allocation2 + $0xdf]] }
 0x176   :  { %v858_v52 = vadd.f32 %v857_v14, %v854_v9  ;;  %v896_v27 = vmul.f32 %v895_v24, %v551_v31  ;;  %v899_v18 = vstv %s2208_s4  ;;  %s2243_s5 = sld [smem:[#allocation2 + $0xe0]] }
 0x177   :  { %v893_v28 = vadd.f32 %v892_v26, %v889_v34  ;;  %v900_v63 = vmul.f32 %v899_v18, %v618_v33  ;;  %v903_v55 = vstv %s2213_s24  ;;  %s1205_s27 = sld [smem:[#allocation2 + $0xe1]] }
 0x178   :  { %v862_v57 = vadd.f32 %v861_v36, %v858_v52  ;;  %s1206_s7 = sld [smem:[#allocation2 + $0xe2]]  ;;  %v904_v4 = vmul.f32 %v903_v55, %v685_v38  ;;  %v907_v6 = vstv %s2218_s3 }
 0x179   :  { %v897_v37 = vadd.f32 %v896_v27, %v893_v28  ;;  %s1207_s8 = sld [smem:[#allocation2 + $0xe3]]  ;;  %v908_v20 = vmul.f32 %v907_v6, %v752_v45  ;;  %v884_v30 = vstv %s2223_s23 }
 0x17a   :  { %v866_v60 = vadd.f32 %v865_v54, %v862_v57  ;;  %s2257_s21 = sld [smem:[#allocation2 + $0xe4]]  ;;  %v911_v32 = vstv %s2229_s10 }
 0x17b   :  { %v901_v7 = vadd.f32 %v900_v63, %v897_v37  ;;  %s2260_s30 = sld [smem:[#allocation2 + $0xe5]]  ;;  %v912_v35 = vmul.f32 %v911_v32, %v819_v8  ;;  %v915_v29 = vstv %s2237_s16 }
 0x17c   :  { %v870_v10 = vadd.f32 %v869_v58, %v866_v60  ;;  %v922_v40 = vstv %s2243_s5  ;;  %s2264_s17 = sld [smem:[#allocation2 + $0xe6]] }
 0x17d   :  { %v923_v15 = vmul.f32 %v922_v40, %v417_v12  ;;  %v925_v17 = vstv %s1205_s27  ;;  %s2269_s20 = sld [smem:[#allocation2 + $0xe7]]  ;;  %v905_v19 = vadd.f32 %v904_v4, %v901_v7 }
 0x17e   :  { %v874_v21 = vadd.f32 %v873_v3, %v870_v10  ;;  %v926_v0 = vmul.f32 %v925_v17, %v484_v13  ;;  %v929_v11 = vstv %s1206_s7  ;;  %s1203_s9 = sld [smem:[#allocation2 + $0xe8]] }
 0x17f   :  { %v930_v2 = vmul.f32 %v929_v11, %v551_v31  ;;  %v933_v22 = vstv %s1207_s8  ;;  %v909_v13 = vadd.f32 %v908_v20, %v905_v19  ;;  %s1212_s11 = sld [smem:[#allocation2 + $0xe9]] }
 0x180   :  { %v878_v25 = vadd.f32 %v877_v53, %v874_v21  ;;  %v927_v5 = vadd.f32 %v926_v0, %v923_v15  ;;  %v934_v39 = vmul.f32 %v933_v22, %v618_v33  ;;  %v937_v12 = vstv %s2257_s21 }
 0x181   :  { %v941_v42 = vstv %s2260_s30  ;;  %v938_v61 = vmul.f32 %v937_v12, %v685_v38  ;;  %v913_v1 = vadd.f32 %v912_v35, %v909_v13 }
 0x182   :  { %v882_v48 = vadd.f32 %v881_v62, %v878_v25  ;;  %v931_v43 = vadd.f32 %v930_v2, %v927_v5  ;;  %v945_v31 = vstv %s2264_s17  ;;  %v942_v36 = vmul.f32 %v941_v42, %v752_v45 }
 0x183   :  { %v949_v47 = vstv %s2269_s20  ;;  %v946_v9 = vmul.f32 %v945_v31, %v819_v8 }
 0x184   :  { %v885_v14 = vadd.f32 %v884_v30, %v882_v48  ;;  %v935_v44 = vadd.f32 %v934_v39, %v931_v43  ;;  %v919_v50 = vstv %s1203_s9 }
 0x185   :  { %v953_v52 = vstv %s1212_s11 }
 0x186   :  { %v886_v33 = vmax.f32 %v885_v14, 0.0  ;;  %v939_v23 = vadd.f32 %v938_v61, %v935_v44 }
 0x188   :  { %v916_v34 = vmul.f32 %v915_v29, %v886_v33  ;;  %v943_v46 = vadd.f32 %v942_v36, %v939_v23  ;;  %v950_v16 = vmul.f32 %v949_v47, %v886_v33 }
 0x18a   :  { %v917_v26 = vadd.f32 %v916_v34, %v913_v1  ;;  %v947_v24 = vadd.f32 %v946_v9, %v943_v46 }
 0x18c   :  { %v920_v49 = vadd.f32 %v919_v50, %v917_v26  ;;  %v951_v38 = vadd.f32 %v950_v16, %v947_v24 }
 0x18e   :  { %v954_v54 = vadd.f32 %v953_v52, %v951_v38  ;;  %955 = vst [vmem:[#allocation7] sm:$0xff] %v920_v49 }
 0x190   :  { %957 = vst [vmem:[#allocation7 + $0x8] sm:$0xff] %v954_v54 }
 0x191   :  { %1257 = shalt.err (!%p1254_p9)
}
 0x192   :  { %s2429_s26 = smov 8   ;;  %s2430_s28 = smov 128  }
 0x193   :  { %s2431_s25 = sld [smem:[#allocation55_spill]] }
 0x199   :  { %969 = dma.vmem_to_hbm [thread:$0]  %s964_s22, 256, %s2431_s25, [#allocation4], %s2430_s28, %s2430_s28, %s2429_s26  }
 0x19a   :  { %1270 = dma.done.wait [#allocation4], 256  }
 0x19b   :  { %1271 = vsyncadd [#allocation4], 4294967040 }
 0x19c   :  { %973 = vsyncpa [#allocation3], 1 }
 0x19d   :  { %974 = vsyncpa [#allocation4], 1 }
 0x19e   :  { %975 = vsyncpa [#allocation5], 1 }

</bundles_post_ra>
